<compile_context>
chip_gen: v6e
topology: v6e:2x2x1
jax: 0.10.0
libtpu: 0.0.40
codegen_flags: <defaults>
</compile_context>

<pallas_src>
import jax
import jax.numpy as jnp
import numpy as np
from jax.experimental import pallas as pl
from jax.experimental.pallas import tpu as pltpu


def _round_up(x, m):
    return ((x + m - 1) // m) * m


def seq_query_kernel(seg_ref, sess_ref, qw1b_ref, w2t_ref, wa_ref, ba_ref, out_ref):
    """One grid step = one TILE_N slab of node rows, accumulated into out_ref."""
    # Zero the resident per-chunk output accumulator on the chunk's first tile.
    @pl.when(pl.program_id(1) == 0)
    def _():
        out_ref[...] = jnp.zeros_like(out_ref)

    sess = sess_ref[...]                       # [TILE_N, H]  compute dtype (f32 / bf16)
    seg = seg_ref[...]                         # [TILE_N, 1]  int32 (-1 = padding row)
    tile_n = sess.shape[0]
    mp = out_ref.shape[0]

    # Single on-chip one-hot [TILE_N, Mp] used for BOTH the query gather and the
    # segment scatter-add.  Padding rows (seg == -1) give an all-zero row/column:
    # their sigmoid/weight is nonzero but they pick up no query and scatter
    # nothing, so they never contribute to the output (do not "fix" this).
    onehot = seg == jax.lax.broadcasted_iota(jnp.int32, (tile_n, mp), 1)

    # Query path: gather per-node rows of (query @ W1^T + b1 + b2).  qw1b stays
    # f32 for accuracy (tiny and resident; K = Mp so the f32 matmul is cheap).
    pre = jnp.dot(onehot.astype(jnp.float32), qw1b_ref[...],
                  preferred_element_type=jnp.float32)
    # Session path: one MXU matmul with K = H (bf16 inputs on the fast path).
    pre = pre + jnp.dot(sess, w2t_ref[...], preferred_element_type=jnp.float32)

    # Sigmoid on the EUP; in the bf16 path run it in bf16 (~2x EUP throughput on
    # v6e/v7x; on v5e Mosaic inserts converts — still correct).
    h = jax.nn.sigmoid(pre.astype(sess.dtype)).astype(jnp.float32)

    # alpha(.) as a VPU multiply + XLU lane-reduce (keeps the MXU free).
    weight = jnp.sum(h * wa_ref[...], axis=-1, keepdims=True) + ba_ref[0, 0]

    # s_g = weight * sess (f32), then the contiguous-segment sum as a single
    # transposed-contraction matmul over the node axis (bf16 operands on the
    # fast path, f32 accumulation), accumulated into the resident output.
    s_g = (weight * sess.astype(jnp.float32)).astype(sess.dtype)
    out_ref[...] += jax.lax.dot_general(
        onehot.astype(sess.dtype), s_g,
        dimension_numbers=(((0,), (0,)), ((), ())),
        preferred_element_type=jnp.float32)


def seq_query_pallas(sess_embed, query, sections, w1, b1, w2, b2, wa, ba,
                     *, tile_n=512, num_chunks=1, compute_dtype=jnp.float32):
    """sess_embed: [N, H], query: [M, H], sections: list of ints summing to N.

    tile_n:        node rows per grid step (>= 512; 1024-2048 ok on v5e/v6e).
    num_chunks:    set to 2 on v7x so both TensorCores get a node range.
    compute_dtype: bf16 is the fast path on v5e/v6e/v7x; f32 is exact.
    """
    sections = np.asarray(sections, dtype=np.int32)
    n = int(sections.sum())
    m = int(len(sections))
    h = int(sess_embed.shape[1])
    assert sess_embed.shape[0] == n and query.shape == (m, h)

    num_chunks = max(1, int(num_chunks))
    tile_n = max(128, _round_up(int(tile_n), 128))
    mp = _round_up(m, 8)                        # sublane-aligned session rows
    n_pad = _round_up(max(n, 1), tile_n * num_chunks)
    n_tiles_pc = n_pad // (tile_n * num_chunks)  # node tiles per chunk

    f32 = jnp.float32
    cd = jnp.dtype(compute_dtype)
    cd_bytes = cd.itemsize

    # ---- host glue: O(N) segment ids + O(M*H^2) query projection.  No [N, H]
    #      q_repeat, no [M, N] one-hot, no hidden-dim padding in HBM. ----
    seg_np = np.full((n_pad,), -1, dtype=np.int32)
    if n > 0:
        seg_np[:n] = np.repeat(np.arange(m, dtype=np.int32), sections)
    seg_col = jnp.asarray(seg_np).reshape(n_pad, 1)

    sess_p = sess_embed.astype(cd)
    if n_pad != n:                              # zero rows only (seg == -1 there)
        sess_p = jnp.concatenate([sess_p, jnp.zeros((n_pad - n, h), cd)], axis=0)

    # W1 applied once per *session* (M rows); both Linear biases folded in.
    qw1b = (query.astype(f32) @ w1.astype(f32).T
            + b1.astype(f32) + b2.astype(f32))                  # [M, H] f32
    if mp != m:
        qw1b = jnp.concatenate([qw1b, jnp.zeros((mp - m, h), f32)], axis=0)
    w2t = w2.astype(f32).T.astype(cd)                           # [H, H]
    wa_row = wa.astype(f32).reshape(1, h)                       # [1, H] f32
    ba_2d = ba.astype(f32).reshape(1, 1)                        # SMEM scalar

    # ---- VMEM budget (accounts for lane/sublane padding inside VMEM) ----
    hv = _round_up(h, 128)
    vmem_needed = (2 * tile_n * hv * cd_bytes       # sess tile, double-buffered
                   + 2 * tile_n * 128 * 4           # seg-id tile (lane-padded int32)
                   + 2 * mp * hv * 4                # resident qw1b (f32)
                   + 2 * _round_up(h, 8) * hv * cd_bytes   # resident W2^T
                   + 2 * 8 * hv * 4                 # resident alpha weights
                   + 2 * mp * hv * 4)               # resident f32 accumulator
    # Cap well below v7x's 64 MiB physical VMEM to leave compiler headroom.
    vmem_limit = int(min(max(2 * vmem_needed, 8 * 2**20), 48 * 2**20))

    cost = pl.CostEstimate(
        flops=int(2 * n_pad * (2 * mp + h) * h      # gather + W2 + scatter matmuls
                  + 6 * n_pad * h),                 # elementwise / reduce
        transcendentals=int(n_pad * h),             # sigmoid
        bytes_accessed=int(n_pad * h * cd_bytes + n_pad * 4
                           + mp * h * 4 + h * h * cd_bytes + h * 4
                           + num_chunks * mp * h * 4),
    )

    out = pl.pallas_call(
        seq_query_kernel,
        out_shape=jax.ShapeDtypeStruct((num_chunks, mp, h), f32),
        grid=(num_chunks, n_tiles_pc),
        in_specs=[
            pl.BlockSpec((tile_n, 1), lambda c, i: (c * n_tiles_pc + i, 0)),   # seg ids
            pl.BlockSpec((tile_n, h), lambda c, i: (c * n_tiles_pc + i, 0)),   # sess tile
            pl.BlockSpec((mp, h), lambda c, i: (0, 0)),      # query@W1^T + b (resident, f32)
            pl.BlockSpec((h, h), lambda c, i: (0, 0)),       # W2^T (resident)
            pl.BlockSpec((1, h), lambda c, i: (0, 0)),       # alpha weights (f32)
            pl.BlockSpec(memory_space=pltpu.MemorySpace.SMEM),  # alpha bias scalar
        ],
        out_specs=pl.BlockSpec((None, mp, h), lambda c, i: (c, 0, 0)),  # per-chunk accumulator
        compiler_params=pltpu.CompilerParams(
            dimension_semantics=("parallel", "arbitrary"),
            vmem_limit_bytes=vmem_limit,
        ),
        cost_estimate=cost,
    )(seg_col, sess_p, qw1b, w2t, wa_row, ba_2d)

    s_h = out[0] if num_chunks == 1 else jnp.sum(out, axis=0)
    return s_h[:m, :h]


def seq_query_reference(sess_embed, query, sections, w1, b1, w2, b2, wa, ba):
    sections = np.asarray(sections, dtype=np.int32)
    seg_ids = jnp.asarray(np.repeat(np.arange(len(sections), dtype=np.int32), sections))
    q_repeat = query[seg_ids]
    h = jax.nn.sigmoid(q_repeat @ w1.T + b1 + sess_embed @ w2.T + b2)
    weight = h @ wa.T + ba
    s_g = weight * sess_embed
    return jax.ops.segment_sum(s_g, seg_ids, num_segments=len(sections))


def xavier_uniform(key, shape):
    fan_out, fan_in = shape
    limit = float(np.sqrt(6.0 / (fan_in + fan_out)))
    return jax.random.uniform(key, shape, jnp.float32, -limit, limit)


if __name__ == "__main__":
    hidden = 32
    # 40 sessions (one deliberately empty), 149 node rows.
    sections = [int(i % 7) + 1 for i in range(40)]
    sections[5] = 0
    n_total = sum(sections)
    n_sess = len(sections)

    key = jax.random.PRNGKey(0)
    k_sess, k_query, k_w1, k_w2, k_wa = jax.random.split(key, 5)

    sess_embed = jax.random.normal(k_sess, (n_total, hidden), jnp.float32)
    query = jax.random.normal(k_query, (n_sess, hidden), jnp.float32)

    # Linear params (PyTorch convention: weight [out, in], bias [out]);
    # xavier_uniform weights, zero biases.
    w1 = xavier_uniform(k_w1, (hidden, hidden))
    b1 = jnp.zeros((hidden,), jnp.float32)
    w2 = xavier_uniform(k_w2, (hidden, hidden))
    b2 = jnp.zeros((hidden,), jnp.float32)
    wa = xavier_uniform(k_wa, (1, hidden))
    ba = jnp.zeros((1,), jnp.float32)

    ref = seq_query_reference(sess_embed, query, sections, w1, b1, w2, b2, wa, ba)

    # f32 MXU path (exact within fp32 tolerance), single chunk.
    out_f32 = seq_query_pallas(sess_embed, query, sections, w1, b1, w2, b2, wa, ba,
                               tile_n=512, num_chunks=1, compute_dtype=jnp.float32)
    out_f32 = jax.block_until_ready(out_f32)
    np.testing.assert_allclose(np.asarray(out_f32), np.asarray(ref), rtol=1e-4, atol=1e-4)

    # bf16 fast path (f32 accumulation, f32 query projection), two chunks to
    # exercise the v7x dual-TensorCore ("parallel") grid axis.
    out_bf16 = seq_query_pallas(sess_embed, query, sections, w1, b1, w2, b2, wa, ba,
                                tile_n=512, num_chunks=2, compute_dtype=jnp.bfloat16)
    out_bf16 = jax.block_until_ready(out_bf16)
    np.testing.assert_allclose(np.asarray(out_bf16), np.asarray(ref), rtol=0.1, atol=0.3)

    print("KERNEL_OK")
</pallas_src>

<mosaic_0001>
module attributes {stable_mosaic.version = 11 : i64} {
  func.func @seq_query_kernel(%arg0: i32, %arg1: i32, %arg2: memref<512x1xi32, #tpu.memory_space<vmem>>, %arg3: memref<512x32xf32, #tpu.memory_space<vmem>>, %arg4: memref<40x32xf32, #tpu.memory_space<vmem>>, %arg5: memref<32x32xf32, #tpu.memory_space<vmem>>, %arg6: memref<1x32xf32, #tpu.memory_space<vmem>>, %arg7: memref<1x1xf32, #tpu.memory_space<smem>>, %arg8: memref<1x40x32xf32, #tpu.memory_space<vmem>>) attributes {dimension_semantics = [#tpu.dimension_semantics<parallel>, #tpu.dimension_semantics<arbitrary>], iteration_bounds = array<i64: 1, 1>, scalar_prefetch = 0 : i64, scratch_operands = 0 : i64, tpu.core_type = #tpu.core_type<tc>, window_params = [{transform_indices = @transform_0, window_bounds = array<i64: 512, 1>}, {transform_indices = @transform_1, window_bounds = array<i64: 512, 32>}, {pipeline_mode = #tpu.pipeline_mode<synchronous>, transform_indices = @transform_2, window_bounds = array<i64: 40, 32>}, {pipeline_mode = #tpu.pipeline_mode<synchronous>, transform_indices = @transform_3, window_bounds = array<i64: 32, 32>}, {pipeline_mode = #tpu.pipeline_mode<synchronous>, transform_indices = @transform_4, window_bounds = array<i64: 1, 32>}, {transform_indices = @transform_5, window_bounds = array<i64: 1, 1>}, {transform_indices = @transform_6, window_bounds = array<i64: 1, 40, 32>}]} {
    %c0_i32 = arith.constant 0 : i32
    %0 = arith.cmpi eq, %arg1, %c0_i32 : i32
    %1 = arith.extui %0 : i1 to i32
    %c0_i32_0 = arith.constant 0 : i32
    %2 = arith.cmpi ne, %1, %c0_i32_0 : i32
    scf.if %2 {
      %cst_22 = arith.constant 0.000000e+00 : f32
      %39 = vector.broadcast %cst_22 : f32 to vector<40x32xf32>
      %c0_23 = arith.constant 0 : index
      %c0_24 = arith.constant 0 : index
      %c0_25 = arith.constant 0 : index
      %40 = vector.load %arg8[%c0_23, %c0_24, %c0_25] : memref<1x40x32xf32, #tpu.memory_space<vmem>>, vector<1x40x32xf32>
      %41 = vector.shape_cast %40 : vector<1x40x32xf32> to vector<40x32xf32>
      %42 = vector.shape_cast %39 : vector<40x32xf32> to vector<1x40x32xf32>
      tpu.vector_store %arg8[%c0_23, %c0_24, %c0_25], %42 {strides = array<i32>} : memref<1x40x32xf32, #tpu.memory_space<vmem>>, vector<1x40x32xf32>,
    } else {
    }
    %c0 = arith.constant 0 : index
    %c0_1 = arith.constant 0 : index
    %3 = vector.load %arg3[%c0, %c0_1] : memref<512x32xf32, #tpu.memory_space<vmem>>, vector<512x32xf32>
    %c0_2 = arith.constant 0 : index
    %c0_3 = arith.constant 0 : index
    %4 = vector.load %arg2[%c0_2, %c0_3] : memref<512x1xi32, #tpu.memory_space<vmem>>, vector<512x1xi32>
    %5 = tpu.iota {dimensions = array<i32: 1>} : vector<512x40xi32>
    %6 = vector.broadcast %4 : vector<512x1xi32> to vector<512x40xi32>
    %7 = arith.cmpi eq, %6, %5 : vector<512x40xi32>
    %8 = arith.extui %7 : vector<512x40xi1> to vector<512x40xi32>
    %9 = arith.sitofp %8 : vector<512x40xi32> to vector<512x40xf32>
    %c0_4 = arith.constant 0 : index
    %c0_5 = arith.constant 0 : index
    %10 = vector.load %arg4[%c0_4, %c0_5] : memref<40x32xf32, #tpu.memory_space<vmem>>, vector<40x32xf32>
    %cst = arith.constant dense<0.000000e+00> : vector<512x32xf32>
    %11 = tpu.matmul %9, %10, %cst {dimension_numbers = #tpu.dot_dimension_numbers<[1], [0], [0], [1], [0, 0, 1, 1], [], []>} : vector<512x40xf32>, vector<40x32xf32>, vector<512x32xf32> -> vector<512x32xf32>
    %c0_6 = arith.constant 0 : index
    %c0_7 = arith.constant 0 : index
    %12 = vector.load %arg5[%c0_6, %c0_7] : memref<32x32xf32, #tpu.memory_space<vmem>>, vector<32x32xf32>
    %cst_8 = arith.constant dense<0.000000e+00> : vector<512x32xf32>
    %13 = tpu.matmul %3, %12, %cst_8 {dimension_numbers = #tpu.dot_dimension_numbers<[1], [0], [0], [1], [0, 0, 1, 1], [], []>} : vector<512x32xf32>, vector<32x32xf32>, vector<512x32xf32> -> vector<512x32xf32>
    %14 = arith.addf %11, %13 : vector<512x32xf32>
    %15 = arith.negf %14 : vector<512x32xf32>
    %16 = math.exp %15 : vector<512x32xf32>
    %cst_9 = arith.constant 1.000000e+00 : f32
    %17 = vector.broadcast %cst_9 : f32 to vector<512x32xf32>
    %18 = arith.addf %17, %16 : vector<512x32xf32>
    %19 = arith.divf %17, %18 : vector<512x32xf32>
    %c0_10 = arith.constant 0 : index
    %c0_11 = arith.constant 0 : index
    %20 = vector.load %arg6[%c0_10, %c0_11] : memref<1x32xf32, #tpu.memory_space<vmem>>, vector<1x32xf32>
    %21 = vector.broadcast %20 : vector<1x32xf32> to vector<512x32xf32>
    %22 = arith.mulf %19, %21 : vector<512x32xf32>
    %cst_12 = arith.constant dense<0.000000e+00> : vector<512xf32>
    %23 = vector.multi_reduction <add>, %22, %cst_12 [1] : vector<512x32xf32> to vector<512xf32>
    %24 = vector.shape_cast %23 : vector<512xf32> to vector<512x1xf32>
    %c0_13 = arith.constant 0 : index
    %c0_14 = arith.constant 0 : index
    %25 = memref.load %arg7[%c0_13, %c0_14] : memref<1x1xf32, #tpu.memory_space<smem>>
    %26 = vector.broadcast %25 : f32 to vector<512x1xf32>
    %27 = arith.addf %24, %26 : vector<512x1xf32>
    %28 = vector.broadcast %27 : vector<512x1xf32> to vector<512x32xf32>
    %29 = arith.mulf %28, %3 : vector<512x32xf32>
    %c0_15 = arith.constant 0 : index
    %c0_16 = arith.constant 0 : index
    %c0_17 = arith.constant 0 : index
    %30 = vector.load %arg8[%c0_15, %c0_16, %c0_17] : memref<1x40x32xf32, #tpu.memory_space<vmem>>, vector<1x40x32xf32>
    %31 = vector.shape_cast %30 : vector<1x40x32xf32> to vector<40x32xf32>
    %32 = arith.extui %7 : vector<512x40xi1> to vector<512x40xi32>
    %33 = arith.sitofp %32 : vector<512x40xi32> to vector<512x40xf32>
    %cst_18 = arith.constant dense<0.000000e+00> : vector<40x32xf32>
    %34 = tpu.matmul %33, %29, %cst_18 {dimension_numbers = #tpu.dot_dimension_numbers<[0], [0], [1], [1], [0, 1, 1, 1], [], []>} : vector<512x40xf32>, vector<512x32xf32>, vector<40x32xf32> -> vector<40x32xf32>
    %35 = arith.addf %31, %34 : vector<40x32xf32>
    %c0_19 = arith.constant 0 : index
    %c0_20 = arith.constant 0 : index
    %c0_21 = arith.constant 0 : index
    %36 = vector.load %arg8[%c0_19, %c0_20, %c0_21] : memref<1x40x32xf32, #tpu.memory_space<vmem>>, vector<1x40x32xf32>
    %37 = vector.shape_cast %36 : vector<1x40x32xf32> to vector<40x32xf32>
    %38 = vector.shape_cast %35 : vector<40x32xf32> to vector<1x40x32xf32>
    tpu.vector_store %arg8[%c0_19, %c0_20, %c0_21], %38 {strides = array<i32>} : memref<1x40x32xf32, #tpu.memory_space<vmem>>, vector<1x40x32xf32>,
    return
  }
  func.func @transform_0(%arg0: i32, %arg1: i32) -> (i32, i32) {
    %c1_i32 = arith.constant 1 : i32
    %0 = arith.muli %arg0, %c1_i32 : i32
    %1 = arith.addi %0, %arg1 : i32
    %c0_i32 = arith.constant 0 : i32
    %c0_i32_0 = arith.constant 0 : i32
    return %1, %c0_i32 : i32, i32
  }
  func.func @transform_1(%arg0: i32, %arg1: i32) -> (i32, i32) {
    %c1_i32 = arith.constant 1 : i32
    %0 = arith.muli %arg0, %c1_i32 : i32
    %1 = arith.addi %0, %arg1 : i32
    %c0_i32 = arith.constant 0 : i32
    %c0_i32_0 = arith.constant 0 : i32
    return %1, %c0_i32 : i32, i32
  }
  func.func @transform_2(%arg0: i32, %arg1: i32) -> (i32, i32) {
    %c0_i32 = arith.constant 0 : i32
    %c0_i32_0 = arith.constant 0 : i32
    %c0_i32_1 = arith.constant 0 : i32
    return %c0_i32, %c0_i32_0 : i32, i32
  }
  func.func @transform_3(%arg0: i32, %arg1: i32) -> (i32, i32) {
    %c0_i32 = arith.constant 0 : i32
    %c0_i32_0 = arith.constant 0 : i32
    %c0_i32_1 = arith.constant 0 : i32
    return %c0_i32, %c0_i32_0 : i32, i32
  }
  func.func @transform_4(%arg0: i32, %arg1: i32) -> (i32, i32) {
    %c0_i32 = arith.constant 0 : i32
    %c0_i32_0 = arith.constant 0 : i32
    %c0_i32_1 = arith.constant 0 : i32
    return %c0_i32, %c0_i32_0 : i32, i32
  }
  func.func @transform_5(%arg0: i32, %arg1: i32) -> (i32, i32) {
    %c0_i32 = arith.constant 0 : i32
    %c0_i32_0 = arith.constant 0 : i32
    %c0_i32_1 = arith.constant 0 : i32
    return %c0_i32, %c0_i32_0 : i32, i32
  }
  func.func @transform_6(%arg0: i32, %arg1: i32) -> (i32, i32, i32) {
    %c0_i32 = arith.constant 0 : i32
    %c0_i32_0 = arith.constant 0 : i32
    %c0_i32_1 = arith.constant 0 : i32
    return %arg0, %c0_i32, %c0_i32_0 : i32, i32, i32
  }
}

</mosaic_0001>

<bundles_post_ra>
// kernel: tpu_custom_call.1
= control target key start
LH: loop header
LB: loop body
LE: loop exit
PB: predicated region body
PF: predicated region fallthrough
CT: control target
= control target key end

     0   :  { %v4010_v0 = vmov 0   ;;  %vm72_vm0 = vcmask 261120   ;;  %vm1179_vm1 = vcmask 326656   ;;  %s5954_s0 = inlined_call_operand.vmem [shape: s32[512,1], index: 0, kind: input, shape index: {}]   ;;  %s5955_s3 = inlined_call_operand.vmem [shape: f32[32,32], index: 3, kind: input, shape index: {}]   ;;  %s5956_s2 = inlined_call_operand.vmem [shape: f32[40,32], index: 2, kind: input, shape index: {}]   ;;  %s5957_s1 = inlined_call_operand.vmem [shape: f32[512,32], index: 1, kind: input, shape index: {}]   ;;  %s5958_s4 = inlined_call_operand.vmem [shape: f32[1,32], index: 4, kind: input, shape index: {}]   ;;  %s5959_s5 = inlined_call_operand.<no memory space> [shape: f32[1,1], index: 5, kind: input, shape index: {}]   ;;  %s5960_s6 = inlined_call_operand.vmem [shape: f32[1,40,32], index: 6, kind: output, shape index: {}]  }
   0x1   :  { %3574 = vset.pattern.permute.xlu1 %v4010_v0  ;;  %3573 = vset.pattern.permute.xlu0 %v4010_v0  ;;  %v144_v1 = vld [vmem:[%s5954_s0 + $0x10] sm:$0xff]  ;;  %v142_v2 = vld [vmem:[%s5954_s0] sm:$0xff]  ;;  %v145_v3 = vld [vmem:[%s5954_s0 + $0x18] sm:$0xff] }
   0x2   :  { %215 = vperm.xlu1 %3574, %v144_v1   ;;  %209 = vperm.xlu0 %3573, %v142_v2   ;;  %v143_v4 = vld [vmem:[%s5954_s0 + $0x8] sm:$0xff]  ;;  %v146_v6 = vld [vmem:[%s5954_s0 + $0x20] sm:$0xff]  ;;  %v149_v7 = vld [vmem:[%s5954_s0 + $0x38] sm:$0xff] }
   0x3   :  { %v147_v5 = vld [vmem:[%s5954_s0 + $0x28] sm:$0xff]  ;;  %v148_v8 = vld [vmem:[%s5954_s0 + $0x30] sm:$0xff]  ;;  %v150_v10 = vld [vmem:[%s5954_s0 + $0x40] sm:$0xff] }
   0x4   :  { %v151_v9 = vld [vmem:[%s5954_s0 + $0x48] sm:$0xff]  ;;  %v153_v11 = vld [vmem:[%s5954_s0 + $0x58] sm:$0xff]  ;;  %v152_v12 = vld [vmem:[%s5954_s0 + $0x50] sm:$0xff] }
   0x5   :  { %v600_v13 = vld [vmem:[%s5955_s3 + $0x18] sm:$0xff]  ;;  %v596_v14 = vld [vmem:[%s5956_s2 + $0x20] sm:$0xff]  ;;  %v599_v15 = vld [vmem:[%s5955_s3 + $0x10] sm:$0xff] }
   0x6   :  { %218 = vperm.xlu1 %3574, %v145_v3   ;;  %212 = vperm.xlu0 %3573, %v143_v4   ;;  %v595_v16 = vld [vmem:[%s5956_s2 + $0x18] sm:$0xff]  ;;  %v155_v17 = vld [vmem:[%s5954_s0 + $0x68] sm:$0xff]  ;;  %v154_v18 = vld [vmem:[%s5954_s0 + $0x60] sm:$0xff] }
   0x7   :  { %3361 = vmatprep.subr.mxu0 %v600_v13  ;;  %3465 = vmatprep.subr.mxu1 %v596_v14  ;;  %v598_v19 = vld [vmem:[%s5955_s3 + $0x8] sm:$0xff]  ;;  %v594_v20 = vld [vmem:[%s5956_s2 + $0x10] sm:$0xff]  ;;  %v157_v21 = vld [vmem:[%s5954_s0 + $0x78] sm:$0xff] }
   0x8   :  { %3362 = vmatpush3.msra.mxu0 %v600_v13  ;;  %3466 = vmatpush3.msra.mxu1 %v596_v14  ;;  %v156_v22 = vld [vmem:[%s5954_s0 + $0x70] sm:$0xff]  ;;  %v597_v23 = vld [vmem:[%s5955_s3] sm:$0xff]  ;;  %v593_v24 = vld [vmem:[%s5956_s2 + $0x8] sm:$0xff] }
   0x9   :  { %3363 = vmatprep.subr.mxu0 %v599_v15  ;;  %3467 = vmatprep.subr.mxu1 %v595_v16  ;;  %v78_v25 = vld [vmem:[%s5957_s1] sm:$0xff]  ;;  %v79_v26 = vld [vmem:[%s5957_s1 + $0x8] sm:$0xff]  ;;  %v80_v30 = vld [vmem:[%s5957_s1 + $0x10] sm:$0xff] }
   0xa   :  { %224 = vperm.xlu1 %3574, %v147_v5   ;;  %221 = vperm.xlu0 %3573, %v146_v6   ;;  %v159_v27 = vld [vmem:[%s5954_s0 + $0x88] sm:$0xff]  ;;  %v158_v28 = vld [vmem:[%s5954_s0 + $0x80] sm:$0xff]  ;;  %v81_v31 = vld [vmem:[%s5957_s1 + $0x18] sm:$0xff] }
   0xb   :  { %3364 = vmatpush3.msra.mxu0 %v599_v15  ;;  %3468 = vmatpush3.msra.mxu1 %v595_v16  ;;  %v592_v29 = vld [vmem:[%s5956_s2] sm:$0xff]  ;;  %v161_v32 = vld [vmem:[%s5954_s0 + $0x98] sm:$0xff]  ;;  %v160_v33 = vld [vmem:[%s5954_s0 + $0x90] sm:$0xff] }
   0xc   :  { %3365 = vmatprep.subr.mxu0 %v598_v19  ;;  %3469 = vmatprep.subr.mxu1 %v594_v20  ;;  %v82_v34 = vld [vmem:[%s5957_s1 + $0x20] sm:$0xff]  ;;  %v83_v35 = vld [vmem:[%s5957_s1 + $0x28] sm:$0xff]  ;;  %v84_v38 = vld [vmem:[%s5957_s1 + $0x30] sm:$0xff] }
   0xd   :  { %3366 = vmatpush3.msra.mxu0 %v598_v19  ;;  %3470 = vmatpush3.msra.mxu1 %v594_v20  ;;  %v163_v36 = vld [vmem:[%s5954_s0 + $0xa8] sm:$0xff]  ;;  %v162_v37 = vld [vmem:[%s5954_s0 + $0xa0] sm:$0xff]  ;;  %v85_v39 = vld [vmem:[%s5957_s1 + $0x38] sm:$0xff] }
   0xe   :  { %230 = vperm.xlu1 %3574, %v149_v7   ;;  %227 = vperm.xlu0 %3573, %v148_v8   ;;  %v165_v40 = vld [vmem:[%s5954_s0 + $0xb8] sm:$0xff]  ;;  %v164_v41 = vld [vmem:[%s5954_s0 + $0xb0] sm:$0xff]  ;;  %v86_v42 = vld [vmem:[%s5957_s1 + $0x40] sm:$0xff] }
   0xf   :  { %3367 = vmatprep.subr.mxu0 %v597_v23  ;;  %3471 = vmatprep.subr.mxu1 %v593_v24  ;;  %v87_v43 = vld [vmem:[%s5957_s1 + $0x48] sm:$0xff]  ;;  %v166_v45 = vld [vmem:[%s5954_s0 + $0xc0] sm:$0xff]  ;;  %v88_v46 = vld [vmem:[%s5957_s1 + $0x50] sm:$0xff] }
  0x10   :  { %3368 = vmatpush3.msra.mxu0 %v597_v23  ;;  %3369 = vmatprep.mubr.msk.f32.mxu0 %vm72_vm0, %v78_v25  ;;  %v167_v44 = vld [vmem:[%s5954_s0 + $0xc8] sm:$0xff]  ;;  %v89_v47 = vld [vmem:[%s5957_s1 + $0x58] sm:$0xff]  ;;  %v168_v49 = vld [vmem:[%s5954_s0 + $0xd0] sm:$0xff] }
  0x11   :  { %3472 = vmatpush3.msra.mxu1 %v593_v24  ;;  %3370 = vmatmul.mubr.msk.f32.vlgmr.msra.gmra.mxu0 %vm72_vm0, %v79_v26  ;;  %v169_v48 = vld [vmem:[%s5954_s0 + $0xd8] sm:$0xff]  ;;  %v90_v50 = vld [vmem:[%s5957_s1 + $0x60] sm:$0xff]  ;;  %v91_v51 = vld [vmem:[%s5957_s1 + $0x68] sm:$0xff] }
  0x12   :  { %236 = vperm.xlu1 %3574, %v151_v9   ;;  %233 = vperm.xlu0 %3573, %v150_v10   ;;  %v171_v52 = vld [vmem:[%s5954_s0 + $0xe8] sm:$0xff]  ;;  %v170_v53 = vld [vmem:[%s5954_s0 + $0xe0] sm:$0xff]  ;;  %v92_v54 = vld [vmem:[%s5957_s1 + $0x70] sm:$0xff] }
  0x13   :  { %3473 = vmatprep.subr.mxu1 %v592_v29  ;;  %3372 = vmatprep.mubr.msk.f32.mxu0 %vm72_vm0, %v80_v30  ;;  %v93_v55 = vld [vmem:[%s5957_s1 + $0x78] sm:$0xff]  ;;  %v172_v57 = vld [vmem:[%s5954_s0 + $0xf0] sm:$0xff]  ;;  %v94_v58 = vld [vmem:[%s5957_s1 + $0x80] sm:$0xff] }
  0x14   :  { %3474 = vmatpush3.msra.mxu1 %v592_v29  ;;  %v173_v56 = vld [vmem:[%s5954_s0 + $0xf8] sm:$0xff]  ;;  %v95_v59 = vld [vmem:[%s5957_s1 + $0x88] sm:$0xff]  ;;  %v174_v61 = vld [vmem:[%s5954_s0 + $0x100] sm:$0xff] }
  0x15   :  { %3373 = vmatmul.mubr.msk.f32.gmra.mxu0 %vm72_vm0, %v81_v31  ;;  %v175_v60 = vld [vmem:[%s5954_s0 + $0x108] sm:$0xff]  ;;  %v96_v62 = vld [vmem:[%s5957_s1 + $0x90] sm:$0xff]  ;;  %v97_v63 = vld [vmem:[%s5957_s1 + $0x98] sm:$0xff] }
  0x16   :  { %242 = vperm.xlu1 %3574, %v153_v11   ;;  %239 = vperm.xlu0 %3573, %v152_v12   ;;  %v177_v0 = vld [vmem:[%s5954_s0 + $0x118] sm:$0xff]  ;;  %v176_v1 = vld [vmem:[%s5954_s0 + $0x110] sm:$0xff]  ;;  %v98_v2 = vld [vmem:[%s5957_s1 + $0xa0] sm:$0xff] }
  0x17   :  { %3375 = vmatprep.mubr.msk.f32.mxu0 %vm72_vm0, %v82_v34  ;;  %v99_v3 = vld [vmem:[%s5957_s1 + $0xa8] sm:$0xff]  ;;  %v178_v5 = vld [vmem:[%s5954_s0 + $0x120] sm:$0xff]  ;;  %v100_v6 = vld [vmem:[%s5957_s1 + $0xb0] sm:$0xff] }
  0x18   :  { %v179_v4 = vld [vmem:[%s5954_s0 + $0x128] sm:$0xff]  ;;  %v101_v7 = vld [vmem:[%s5957_s1 + $0xb8] sm:$0xff]  ;;  %v180_v9 = vld [vmem:[%s5954_s0 + $0x130] sm:$0xff] }
  0x19   :  { %3376 = vmatmul.mubr.msk.f32.gmra.mxu0 %vm72_vm0, %v83_v35  ;;  %v181_v8 = vld [vmem:[%s5954_s0 + $0x138] sm:$0xff]  ;;  %v102_v10 = vld [vmem:[%s5957_s1 + $0xc0] sm:$0xff]  ;;  %v103_v11 = vld [vmem:[%s5957_s1 + $0xc8] sm:$0xff] }
  0x1a   :  { %248 = vperm.xlu1 %3574, %v155_v17   ;;  %245 = vperm.xlu0 %3573, %v154_v18   ;;  %v183_v12 = vld [vmem:[%s5954_s0 + $0x148] sm:$0xff]  ;;  %v182_v13 = vld [vmem:[%s5954_s0 + $0x140] sm:$0xff]  ;;  %v104_v14 = vld [vmem:[%s5957_s1 + $0xd0] sm:$0xff] }
  0x1b   :  { %3378 = vmatprep.mubr.msk.f32.mxu0 %vm72_vm0, %v84_v38  ;;  %v105_v15 = vld [vmem:[%s5957_s1 + $0xd8] sm:$0xff]  ;;  %v184_v17 = vld [vmem:[%s5954_s0 + $0x150] sm:$0xff]  ;;  %v106_v18 = vld [vmem:[%s5957_s1 + $0xe0] sm:$0xff] }
  0x1c   :  { %v185_v16 = vld [vmem:[%s5954_s0 + $0x158] sm:$0xff]  ;;  %v107_v19 = vld [vmem:[%s5957_s1 + $0xe8] sm:$0xff]  ;;  %v188_v25 = vld [vmem:[%s5954_s0 + $0x170] sm:$0xff] }
  0x1d   :  { %3379 = vmatmul.mubr.msk.f32.gmra.mxu0 %vm72_vm0, %v85_v39  ;;  %v187_v20 = vld [vmem:[%s5954_s0 + $0x168] sm:$0xff]  ;;  %v109_v23 = vld [vmem:[%s5957_s1 + $0xf8] sm:$0xff]  ;;  %v110_v26 = vld [vmem:[%s5957_s1 + $0x100] sm:$0xff] }
  0x1e   :  { %254 = vperm.xlu1 %3574, %v157_v21   ;;  %251 = vperm.xlu0 %3573, %v156_v22   ;;  %v186_v21 = vld [vmem:[%s5954_s0 + $0x160] sm:$0xff]  ;;  %v108_v22 = vld [vmem:[%s5957_s1 + $0xf0] sm:$0xff]  ;;  %v189_v24 = vld [vmem:[%s5954_s0 + $0x178] sm:$0xff] }
  0x1f   :  { %3381 = vmatprep.mubr.msk.f32.mxu0 %vm72_vm0, %v86_v42  ;;  %v190_v29 = vld [vmem:[%s5954_s0 + $0x180] sm:$0xff]  ;;  %v112_v30 = vld [vmem:[%s5957_s1 + $0x110] sm:$0xff]  ;;  %v113_v31 = vld [vmem:[%s5957_s1 + $0x118] sm:$0xff] }
  0x20   :  { %v114_v34 = vld [vmem:[%s5957_s1 + $0x120] sm:$0xff]  ;;  %v115_v35 = vld [vmem:[%s5957_s1 + $0x128] sm:$0xff]  ;;  %v116_v38 = vld [vmem:[%s5957_s1 + $0x130] sm:$0xff] }
  0x21   :  { %3382 = vmatmul.mubr.msk.f32.gmra.mxu0 %vm72_vm0, %v87_v43  ;;  %v117_v39 = vld [vmem:[%s5957_s1 + $0x138] sm:$0xff]  ;;  %v118_v42 = vld [vmem:[%s5957_s1 + $0x140] sm:$0xff]  ;;  %v119_v43 = vld [vmem:[%s5957_s1 + $0x148] sm:$0xff] }
  0x22   :  { %260 = vperm.xlu1 %3574, %v159_v27   ;;  %257 = vperm.xlu0 %3573, %v158_v28   ;;  %v111_v27 = vld [vmem:[%s5957_s1 + $0x108] sm:$0xff] }
  0x23   :  { %3384 = vmatprep.mubr.msk.f32.mxu0 %vm72_vm0, %v88_v46  ;;  %v191_v28 = vld [vmem:[%s5954_s0 + $0x188] sm:$0xff]  ;;  %v120_v46 = vld [vmem:[%s5957_s1 + $0x150] sm:$0xff] }
  0x25   :  { %3385 = vmatmul.mubr.msk.f32.gmra.mxu0 %vm72_vm0, %v89_v47  ;;  %v121_v47 = vld [vmem:[%s5957_s1 + $0x158] sm:$0xff] }
  0x26   :  { %266 = vperm.xlu1 %3574, %v161_v32   ;;  %263 = vperm.xlu0 %3573, %v160_v33   ;;  %v193_v32 = vld [vmem:[%s5954_s0 + $0x198] sm:$0xff]  ;;  %v192_v33 = vld [vmem:[%s5954_s0 + $0x190] sm:$0xff] }
  0x27   :  { %3387 = vmatprep.mubr.msk.f32.mxu0 %vm72_vm0, %v90_v50  ;;  %v122_v50 = vld [vmem:[%s5957_s1 + $0x160] sm:$0xff] }
  0x29   :  { %3388 = vmatmul.mubr.msk.f32.gmra.mxu0 %vm72_vm0, %v91_v51  ;;  %v206_v51 = vlaneseq }
  0x2a   :  { %272 = vperm.xlu1 %3574, %v163_v36   ;;  %269 = vperm.xlu0 %3573, %v162_v37   ;;  %v195_v36 = vld [vmem:[%s5954_s0 + $0x1a8] sm:$0xff]  ;;  %v194_v37 = vld [vmem:[%s5954_s0 + $0x1a0] sm:$0xff] }
  0x2b   :  { %3390 = vmatprep.mubr.msk.f32.mxu0 %vm72_vm0, %v92_v54  ;;  %v202_v54 = vld [vmem:[%s5954_s0 + $0x1e0] sm:$0xff] }
  0x2d   :  { %3391 = vmatmul.mubr.msk.f32.gmra.mxu0 %vm72_vm0, %v93_v55  ;;  %v124_v55 = vld [vmem:[%s5957_s1 + $0x170] sm:$0xff] }
  0x2e   :  { %278 = vperm.xlu1 %3574, %v165_v40   ;;  %275 = vperm.xlu0 %3573, %v164_v41   ;;  %v197_v40 = vld [vmem:[%s5954_s0 + $0x1b8] sm:$0xff]  ;;  %v196_v41 = vld [vmem:[%s5954_s0 + $0x1b0] sm:$0xff] }
  0x2f   :  { %3393 = vmatprep.mubr.msk.f32.mxu0 %vm72_vm0, %v94_v58  ;;  %v205_v58 = vld [vmem:[%s5954_s0 + $0x1f8] sm:$0xff] }
  0x31   :  { %3394 = vmatmul.mubr.msk.f32.gmra.mxu0 %vm72_vm0, %v95_v59  ;;  %v204_v59 = vld [vmem:[%s5954_s0 + $0x1f0] sm:$0xff] }
  0x32   :  { %284 = vperm.xlu1 %3574, %v167_v44   ;;  %281 = vperm.xlu0 %3573, %v166_v45   ;;  %v199_v44 = vld [vmem:[%s5954_s0 + $0x1c8] sm:$0xff]  ;;  %v198_v45 = vld [vmem:[%s5954_s0 + $0x1c0] sm:$0xff] }
  0x33   :  { %3396 = vmatprep.mubr.msk.f32.mxu0 %vm72_vm0, %v96_v62 }
  0x35   :  { %3397 = vmatmul.mubr.msk.f32.gmra.mxu0 %vm72_vm0, %v97_v63  ;;  %v127_v63 = vld [vmem:[%s5957_s1 + $0x188] sm:$0xff] }
  0x36   :  { %290 = vperm.xlu1 %3574, %v169_v48   ;;  %287 = vperm.xlu0 %3573, %v168_v49   ;;  %v201_v48 = vld [vmem:[%s5954_s0 + $0x1d8] sm:$0xff]  ;;  %v200_v49 = vld [vmem:[%s5954_s0 + $0x1d0] sm:$0xff] }
  0x37   :  { %3399 = vmatprep.mubr.msk.f32.mxu0 %vm72_vm0, %v98_v2  ;;  %v128_v2 = vld [vmem:[%s5957_s1 + $0x190] sm:$0xff] }
  0x39   :  { %3400 = vmatmul.mubr.msk.f32.gmra.mxu0 %vm72_vm0, %v99_v3 }
  0x3a   :  { %296 = vperm.xlu1 %3574, %v171_v52   ;;  %293 = vperm.xlu0 %3573, %v170_v53   ;;  %v123_v52 = vld [vmem:[%s5957_s1 + $0x168] sm:$0xff] }
  0x3b   :  { %3402 = vmatprep.mubr.msk.f32.mxu0 %vm72_vm0, %v100_v6  ;;  %v203_v53 = vld [vmem:[%s5954_s0 + $0x1e8] sm:$0xff]  ;;  %v129_v6 = vld [vmem:[%s5957_s1 + $0x198] sm:$0xff] }
  0x3d   :  { %3403 = vmatmul.mubr.msk.f32.gmra.mxu0 %vm72_vm0, %v101_v7 }
  0x3e   :  { %302 = vperm.xlu1 %3574, %v173_v56   ;;  %299 = vperm.xlu0 %3573, %v172_v57   ;;  %v4447_v56 = vand.u32 127, %v206_v51  ;;  %v125_v57 = vld [vmem:[%s5957_s1 + $0x178] sm:$0xff] }
  0x3f   :  { %3405 = vmatprep.mubr.msk.f32.mxu0 %vm72_vm0, %v102_v10 }
  0x41   :  { %3406 = vmatmul.mubr.msk.f32.gmra.mxu0 %vm72_vm0, %v103_v11  ;;  %v131_v11 = vld [vmem:[%s5957_s1 + $0x1a8] sm:$0xff] }
  0x42   :  { %308 = vperm.xlu1 %3574, %v175_v60   ;;  %305 = vperm.xlu0 %3573, %v174_v61   ;;  %v126_v60 = vld [vmem:[%s5957_s1 + $0x180] sm:$0xff] }
  0x43   :  { %3408 = vmatprep.mubr.msk.f32.mxu0 %vm72_vm0, %v104_v14  ;;  %v132_v14 = vld [vmem:[%s5957_s1 + $0x1b0] sm:$0xff] }
  0x45   :  { %3409 = vmatmul.mubr.msk.f32.gmra.mxu0 %vm72_vm0, %v105_v15 }
  0x46   :  { %314 = vperm.xlu1 %3574, %v177_v0   ;;  %311 = vperm.xlu0 %3573, %v176_v1   ;;  %v5961_v0 = vmov 0.0  }
  0x47   :  { %3411 = vmatprep.mubr.msk.f32.mxu0 %vm72_vm0, %v106_v18 }
  0x49   :  { %3412 = vmatmul.mubr.msk.f32.gmra.mxu0 %vm72_vm0, %v107_v19 }
  0x4a   :  { %320 = vperm.xlu1 %3574, %v179_v4   ;;  %317 = vperm.xlu0 %3573, %v178_v5  }
  0x4b   :  { %3414 = vmatprep.mubr.msk.f32.mxu0 %vm72_vm0, %v108_v22 }
  0x4d   :  { %3415 = vmatmul.mubr.msk.f32.gmra.mxu0 %vm72_vm0, %v109_v23  ;;  %v135_v23 = vld [vmem:[%s5957_s1 + $0x1c8] sm:$0xff] }
  0x4e   :  { %326 = vperm.xlu1 %3574, %v181_v8   ;;  %323 = vperm.xlu0 %3573, %v180_v9   ;;  %v130_v8 = vld [vmem:[%s5957_s1 + $0x1a0] sm:$0xff] }
  0x4f   :  { %3417 = vmatprep.mubr.msk.f32.mxu0 %vm72_vm0, %v110_v26  ;;  %v136_v26 = vld [vmem:[%s5957_s1 + $0x1d0] sm:$0xff] }
  0x51   :  { %3418 = vmatmul.mubr.msk.f32.gmra.mxu0 %vm72_vm0, %v111_v27 }
  0x52   :  { %332 = vperm.xlu1 %3574, %v183_v12   ;;  %329 = vperm.xlu0 %3573, %v182_v13  }
  0x53   :  { %3420 = vmatprep.mubr.msk.f32.mxu0 %vm72_vm0, %v112_v30 }
  0x55   :  { %3421 = vmatmul.mubr.msk.f32.gmra.mxu0 %vm72_vm0, %v113_v31 }
  0x56   :  { %338 = vperm.xlu1 %3574, %v185_v16   ;;  %335 = vperm.xlu0 %3573, %v184_v17   ;;  %v133_v17 = vld [vmem:[%s5957_s1 + $0x1b8] sm:$0xff] }
  0x57   :  { %3423 = vmatprep.mubr.msk.f32.mxu0 %vm72_vm0, %v114_v34 }
  0x59   :  { %3424 = vmatmul.mubr.msk.f32.gmra.mxu0 %vm72_vm0, %v115_v35  ;;  %v139_v35 = vld [vmem:[%s5957_s1 + $0x1e8] sm:$0xff] }
  0x5a   :  { %344 = vperm.xlu1 %3574, %v187_v20   ;;  %341 = vperm.xlu0 %3573, %v186_v21   ;;  %v134_v20 = vld [vmem:[%s5957_s1 + $0x1c0] sm:$0xff] }
  0x5b   :  { %3426 = vmatprep.mubr.msk.f32.mxu0 %vm72_vm0, %v116_v38  ;;  %v140_v38 = vld [vmem:[%s5957_s1 + $0x1f0] sm:$0xff] }
  0x5d   :  { %3427 = vmatmul.mubr.msk.f32.gmra.mxu0 %vm72_vm0, %v117_v39 }
  0x5e   :  { %350 = vperm.xlu1 %3574, %v189_v24   ;;  %347 = vperm.xlu0 %3573, %v188_v25  }
  0x5f   :  { %3429 = vmatprep.mubr.msk.f32.mxu0 %vm72_vm0, %v118_v42 }
  0x61   :  { %3430 = vmatmul.mubr.msk.f32.gmra.mxu0 %vm72_vm0, %v119_v43 }
  0x62   :  { %356 = vperm.xlu1 %3574, %v191_v28   ;;  %353 = vperm.xlu0 %3573, %v190_v29   ;;  %v137_v29 = vld [vmem:[%s5957_s1 + $0x1d8] sm:$0xff] }
  0x63   :  { %3432 = vmatprep.mubr.msk.f32.mxu0 %vm72_vm0, %v120_v46 }
  0x65   :  { %3433 = vmatmul.mubr.msk.f32.gmra.mxu0 %vm72_vm0, %v121_v47 }
  0x66   :  { %362 = vperm.xlu1 %3574, %v193_v32   ;;  %359 = vperm.xlu0 %3573, %v192_v33   ;;  %v138_v32 = vld [vmem:[%s5957_s1 + $0x1e0] sm:$0xff] }
  0x67   :  { %3435 = vmatprep.mubr.msk.f32.mxu0 %vm72_vm0, %v122_v50 }
  0x69   :  { %3436 = vmatmul.mubr.msk.f32.gmra.mxu0 %vm72_vm0, %v123_v52 }
  0x6a   :  { %368 = vperm.xlu1 %3574, %v195_v36   ;;  %365 = vperm.xlu0 %3573, %v194_v37  }
  0x6b   :  { %3438 = vmatprep.mubr.msk.f32.mxu0 %vm72_vm0, %v124_v55 }
  0x6d   :  { %3439 = vmatmul.mubr.msk.f32.gmra.mxu0 %vm72_vm0, %v125_v57 }
  0x6e   :  { %374 = vperm.xlu1 %3574, %v197_v40   ;;  %371 = vperm.xlu0 %3573, %v196_v41   ;;  %v141_v41 = vld [vmem:[%s5957_s1 + $0x1f8] sm:$0xff] }
  0x6f   :  { %3441 = vmatprep.mubr.msk.f32.mxu0 %vm72_vm0, %v126_v60 }
  0x71   :  { %3442 = vmatmul.mubr.msk.f32.gmra.mxu0 %vm72_vm0, %v127_v63 }
  0x72   :  { %380 = vperm.xlu1 %3574, %v199_v44   ;;  %377 = vperm.xlu0 %3573, %v198_v45  }
  0x73   :  { %3444 = vmatprep.mubr.msk.f32.mxu0 %vm72_vm0, %v128_v2 }
  0x75   :  { %3445 = vmatmul.mubr.msk.f32.gmra.mxu0 %vm72_vm0, %v129_v6 }
  0x76   :  { %386 = vperm.xlu1 %3574, %v201_v48   ;;  %383 = vperm.xlu0 %3573, %v200_v49  }
  0x77   :  { %3447 = vmatprep.mubr.msk.f32.mxu0 %vm72_vm0, %v130_v8 }
  0x79   :  { %3448 = vmatmul.mubr.msk.f32.gmra.mxu0 %vm72_vm0, %v131_v11 }
  0x7a   :  { %392 = vperm.xlu1 %3574, %v203_v53   ;;  %389 = vperm.xlu0 %3573, %v202_v54  }
  0x7b   :  { %3450 = vmatprep.mubr.msk.f32.mxu0 %vm72_vm0, %v132_v14 }
  0x7d   :  { %v216_v61 = vpop.permute.xlu1 %215  ;;  %v210_v62 = vpop.permute.xlu0 %209  ;;  %3451 = vmatmul.mubr.msk.f32.gmra.mxu0 %vm72_vm0, %v133_v17 }
  0x7e   :  { %398 = vperm.xlu1 %3574, %v205_v58   ;;  %395 = vperm.xlu0 %3573, %v204_v59   ;;  %vm400_vm2 = vcmp.eq.s32.totalorder %v210_v62, %v4447_v56  ;;  %vm402_vm3 = vcmp.eq.s32.totalorder %v216_v61, %v4447_v56 }
  0x7f   :  { %v4469_v1 = vsel %vm400_vm2, 1.0, %v5961_v0  ;;  %v4479_v5 = vsel %vm402_vm3, 1.0, %v5961_v0  ;;  %3453 = vmatprep.mubr.msk.f32.mxu0 %vm72_vm0, %v134_v20 }
  0x80   :  { %6022 = vst [vmem:[#allocation3_spill] sm:$0xff] %v4469_v1  ;;  %3475 = vmatprep.mubr.msk.f32.mxu1 %vm1179_vm1, %v4469_v1  ;;  %6023 = vst [vmem:[#allocation4_spill] sm:$0xff] %v4479_v5 }
  0x81   :  { %v219_v3 = vpop.permute.xlu1 %218  ;;  %v213_v4 = vpop.permute.xlu0 %212  ;;  %3454 = vmatmul.mubr.msk.f32.gmra.mxu0 %vm72_vm0, %v135_v23 }
  0x82   :  { %vm401_vm4 = vcmp.eq.s32.totalorder %v213_v4, %v4447_v56  ;;  %vm403_vm5 = vcmp.eq.s32.totalorder %v219_v3, %v4447_v56  ;;  %3456 = vmatprep.mubr.msk.f32.mxu0 %vm72_vm0, %v136_v26 }
  0x83   :  { %v4487_v7 = vsel %vm401_vm4, 1.0, %v5961_v0  ;;  %v4504_v12 = vsel %vm403_vm5, 1.0, %v5961_v0 }
  0x84   :  { %6024 = vst [vmem:[#allocation5_spill] sm:$0xff] %v4487_v7  ;;  %3476 = vmatmul.mubr.msk.f32.vlgmr.msra.gmra.mxu1 %vm1179_vm1, %v4487_v7  ;;  %6025 = vst [vmem:[#allocation6_spill] sm:$0xff] %v4504_v12 }
  0x85   :  { %v225_v9 = vpop.permute.xlu1 %224  ;;  %3478 = vmatprep.mubr.msk.f32.mxu1 %vm1179_vm1, %v4479_v5  ;;  %v222_v10 = vpop.permute.xlu0 %221  ;;  %3457 = vmatmul.mubr.msk.f32.gmra.mxu0 %vm72_vm0, %v137_v29 }
  0x86   :  { %vm404_vm6 = vcmp.eq.s32.totalorder %v222_v10, %v4447_v56  ;;  %vm405_vm7 = vcmp.eq.s32.totalorder %v225_v9, %v4447_v56  ;;  %3459 = vmatprep.mubr.msk.f32.mxu0 %vm72_vm0, %v138_v32 }
  0x87   :  { %v4507_v13 = vsel %vm404_vm6, 1.0, %v5961_v0  ;;  %v4524_v18 = vsel %vm405_vm7, 1.0, %v5961_v0 }
  0x88   :  { %6026 = vst [vmem:[#allocation7_spill] sm:$0xff] %v4507_v13  ;;  %3479 = vmatmul.mubr.msk.f32.gmra.mxu1 %vm1179_vm1, %v4504_v12  ;;  %6027 = vst [vmem:[#allocation8_spill] sm:$0xff] %v4524_v18 }
  0x89   :  { %v231_v15 = vpop.permute.xlu1 %230  ;;  %3481 = vmatprep.mubr.msk.f32.mxu1 %vm1179_vm1, %v4507_v13  ;;  %v228_v16 = vpop.permute.xlu0 %227  ;;  %3460 = vmatmul.mubr.msk.f32.gmra.mxu0 %vm72_vm0, %v139_v35 }
  0x8a   :  { %vm406_vm8 = vcmp.eq.s32.totalorder %v228_v16, %v4447_v56  ;;  %vm407_vm9 = vcmp.eq.s32.totalorder %v231_v15, %v4447_v56  ;;  %3462 = vmatprep.mubr.msk.f32.mxu0 %vm72_vm0, %v140_v38  ;;  %v6070_v38 = vmov 0.0  }
  0x8b   :  { %v4527_v19 = vsel %vm406_vm8, 1.0, %v5961_v0  ;;  %v4544_v24 = vsel %vm407_vm9, 1.0, %v5961_v0 }
  0x8c   :  { %6028 = vst [vmem:[#allocation9_spill] sm:$0xff] %v4527_v19  ;;  %3482 = vmatmul.mubr.msk.f32.gmra.mxu1 %vm1179_vm1, %v4524_v18  ;;  %6029 = vst [vmem:[#allocation10_spill] sm:$0xff] %v4544_v24 }
  0x8d   :  { %v237_v21 = vpop.permute.xlu1 %236  ;;  %3484 = vmatprep.mubr.msk.f32.mxu1 %vm1179_vm1, %v4527_v19  ;;  %v234_v22 = vpop.permute.xlu0 %233  ;;  %3463 = vmatmul.mubr.msk.f32.gmra.mxu0 %vm72_vm0, %v141_v41 }
  0x8e   :  { %vm408_vm10 = vcmp.eq.s32.totalorder %v234_v22, %v4447_v56  ;;  %vm409_vm11 = vcmp.eq.s32.totalorder %v237_v21, %v4447_v56 }
  0x8f   :  { %v4547_v25 = vsel %vm408_vm10, 1.0, %v5961_v0  ;;  %v4564_v30 = vsel %vm409_vm11, 1.0, %v5961_v0 }
  0x90   :  { %6030 = vst [vmem:[#allocation11_spill] sm:$0xff] %v4547_v25  ;;  %3485 = vmatmul.mubr.msk.f32.gmra.mxu1 %vm1179_vm1, %v4544_v24  ;;  %6031 = vst [vmem:[#allocation12_spill] sm:$0xff] %v4564_v30 }
  0x91   :  { %v243_v27 = vpop.permute.xlu1 %242  ;;  %3487 = vmatprep.mubr.msk.f32.mxu1 %vm1179_vm1, %v4547_v25  ;;  %v240_v28 = vpop.permute.xlu0 %239 }
  0x92   :  { %vm410_vm12 = vcmp.eq.s32.totalorder %v240_v28, %v4447_v56  ;;  %vm411_vm13 = vcmp.eq.s32.totalorder %v243_v27, %v4447_v56 }
  0x93   :  { %v4567_v31 = vsel %vm410_vm12, 1.0, %v5961_v0  ;;  %v4584_v36 = vsel %vm411_vm13, 1.0, %v5961_v0 }
  0x94   :  { %6032 = vst [vmem:[#allocation13_spill] sm:$0xff] %v4567_v31  ;;  %3488 = vmatmul.mubr.msk.f32.gmra.mxu1 %vm1179_vm1, %v4564_v30  ;;  %6033 = vst [vmem:[#allocation14_spill] sm:$0xff] %v4584_v36 }
  0x95   :  { %v249_v33 = vpop.permute.xlu1 %248  ;;  %3490 = vmatprep.mubr.msk.f32.mxu1 %vm1179_vm1, %v4567_v31  ;;  %v246_v34 = vpop.permute.xlu0 %245 }
  0x96   :  { %vm412_vm14 = vcmp.eq.s32.totalorder %v246_v34, %v4447_v56  ;;  %vm413_vm15 = vcmp.eq.s32.totalorder %v249_v33, %v4447_v56 }
  0x97   :  { %v4587_v37 = vsel %vm412_vm14, 1.0, %v5961_v0  ;;  %v4604_v42 = vsel %vm413_vm15, 1.0, %v5961_v0 }
  0x98   :  { %6034 = vst [vmem:[#allocation15_spill] sm:$0xff] %v4587_v37  ;;  %3491 = vmatmul.mubr.msk.f32.gmra.mxu1 %vm1179_vm1, %v4584_v36  ;;  %6035 = vst [vmem:[#allocation16_spill] sm:$0xff] %v4604_v42 }
  0x99   :  { %v255_v39 = vpop.permute.xlu1 %254  ;;  %3493 = vmatprep.mubr.msk.f32.mxu1 %vm1179_vm1, %v4587_v37  ;;  %v252_v40 = vpop.permute.xlu0 %251 }
  0x9a   :  { %vm414_vm2 = vcmp.eq.s32.totalorder %v252_v40, %v4447_v56  ;;  %vm415_vm3 = vcmp.eq.s32.totalorder %v255_v39, %v4447_v56 }
  0x9b   :  { %v4607_v43 = vsel %vm414_vm2, 1.0, %v5961_v0  ;;  %v4617_v46 = vsel %vm415_vm3, 1.0, %v5961_v0 }
  0x9c   :  { %6036 = vst [vmem:[#allocation17_spill] sm:$0xff] %v4607_v43  ;;  %3494 = vmatmul.mubr.msk.f32.gmra.mxu1 %vm1179_vm1, %v4604_v42  ;;  %6037 = vst [vmem:[#allocation18_spill] sm:$0xff] %v4617_v46 }
  0x9d   :  { %v261_v44 = vpop.permute.xlu1 %260  ;;  %3496 = vmatprep.mubr.msk.f32.mxu1 %vm1179_vm1, %v4607_v43  ;;  %v258_v45 = vpop.permute.xlu0 %257 }
  0x9e   :  { %vm416_vm4 = vcmp.eq.s32.totalorder %v258_v45, %v4447_v56  ;;  %vm417_vm5 = vcmp.eq.s32.totalorder %v261_v44, %v4447_v56 }
  0x9f   :  { %v4620_v47 = vsel %vm416_vm4, 1.0, %v5961_v0  ;;  %v4629_v50 = vsel %vm417_vm5, 1.0, %v5961_v0 }
  0xa0   :  { %3497 = vmatmul.mubr.msk.f32.gmra.mxu1 %vm1179_vm1, %v4617_v46 }
  0xa1   :  { %v267_v48 = vpop.permute.xlu1 %266  ;;  %3499 = vmatprep.mubr.msk.f32.mxu1 %vm1179_vm1, %v4620_v47  ;;  %v264_v49 = vpop.permute.xlu0 %263 }
  0xa2   :  { %vm418_vm6 = vcmp.eq.s32.totalorder %v264_v49, %v4447_v56  ;;  %vm419_vm7 = vcmp.eq.s32.totalorder %v267_v48, %v4447_v56 }
  0xa3   :  { %v4632_v51 = vsel %vm418_vm6, 1.0, %v5961_v0  ;;  %v4641_v54 = vsel %vm419_vm7, 1.0, %v5961_v0 }
  0xa4   :  { %3500 = vmatmul.mubr.msk.f32.gmra.mxu1 %vm1179_vm1, %v4629_v50  ;;  %6038 = vst [vmem:[#allocation19_spill] sm:$0xff] %v4641_v54 }
  0xa5   :  { %v273_v52 = vpop.permute.xlu1 %272  ;;  %3502 = vmatprep.mubr.msk.f32.mxu1 %vm1179_vm1, %v4632_v51  ;;  %v270_v53 = vpop.permute.xlu0 %269 }
  0xa6   :  { %vm420_vm8 = vcmp.eq.s32.totalorder %v270_v53, %v4447_v56  ;;  %vm421_vm9 = vcmp.eq.s32.totalorder %v273_v52, %v4447_v56 }
  0xa7   :  { %v4644_v55 = vsel %vm420_vm8, 1.0, %v5961_v0  ;;  %v4653_v59 = vsel %vm421_vm9, 1.0, %v5961_v0 }
  0xa8   :  { %6039 = vst [vmem:[#allocation20_spill] sm:$0xff] %v4644_v55  ;;  %3503 = vmatmul.mubr.msk.f32.gmra.mxu1 %vm1179_vm1, %v4641_v54  ;;  %6040 = vst [vmem:[#allocation21_spill] sm:$0xff] %v4653_v59 }
  0xa9   :  { %v279_v57 = vpop.permute.xlu1 %278  ;;  %3505 = vmatprep.mubr.msk.f32.mxu1 %vm1179_vm1, %v4644_v55  ;;  %v276_v58 = vpop.permute.xlu0 %275 }
  0xaa   :  { %vm422_vm10 = vcmp.eq.s32.totalorder %v276_v58, %v4447_v56  ;;  %vm423_vm11 = vcmp.eq.s32.totalorder %v279_v57, %v4447_v56 }
  0xab   :  { %v4656_v60 = vsel %vm422_vm10, 1.0, %v5961_v0  ;;  %v4665_v63 = vsel %vm423_vm11, 1.0, %v5961_v0 }
  0xac   :  { %6041 = vst [vmem:[#allocation22_spill] sm:$0xff] %v4656_v60  ;;  %3506 = vmatmul.mubr.msk.f32.gmra.mxu1 %vm1179_vm1, %v4653_v59  ;;  %6042 = vst [vmem:[#allocation23_spill] sm:$0xff] %v4665_v63 }
  0xad   :  { %v285_v61 = vpop.permute.xlu1 %284  ;;  %3508 = vmatprep.mubr.msk.f32.mxu1 %vm1179_vm1, %v4656_v60  ;;  %v282_v62 = vpop.permute.xlu0 %281 }
  0xae   :  { %vm424_vm12 = vcmp.eq.s32.totalorder %v282_v62, %v4447_v56  ;;  %vm425_vm13 = vcmp.eq.s32.totalorder %v285_v61, %v4447_v56 }
  0xaf   :  { %v4668_v2 = vsel %vm424_vm12, 1.0, %v5961_v0  ;;  %v4677_v6 = vsel %vm425_vm13, 1.0, %v5961_v0 }
  0xb0   :  { %6043 = vst [vmem:[#allocation24_spill] sm:$0xff] %v4668_v2  ;;  %3509 = vmatmul.mubr.msk.f32.gmra.mxu1 %vm1179_vm1, %v4665_v63  ;;  %6044 = vst [vmem:[#allocation25_spill] sm:$0xff] %v4677_v6 }
  0xb1   :  { %v291_v3 = vpop.permute.xlu1 %290  ;;  %3511 = vmatprep.mubr.msk.f32.mxu1 %vm1179_vm1, %v4668_v2  ;;  %v288_v4 = vpop.permute.xlu0 %287 }
  0xb2   :  { %vm426_vm14 = vcmp.eq.s32.totalorder %v288_v4, %v4447_v56  ;;  %vm427_vm15 = vcmp.eq.s32.totalorder %v291_v3, %v4447_v56 }
  0xb3   :  { %v4680_v8 = vsel %vm426_vm14, 1.0, %v5961_v0  ;;  %v4689_v11 = vsel %vm427_vm15, 1.0, %v5961_v0 }
  0xb4   :  { %6045 = vst [vmem:[#allocation26_spill] sm:$0xff] %v4680_v8  ;;  %3512 = vmatmul.mubr.msk.f32.gmra.mxu1 %vm1179_vm1, %v4677_v6  ;;  %6046 = vst [vmem:[#allocation27_spill] sm:$0xff] %v4689_v11 }
  0xb5   :  { %v297_v9 = vpop.permute.xlu1 %296  ;;  %3514 = vmatprep.mubr.msk.f32.mxu1 %vm1179_vm1, %v4680_v8  ;;  %v294_v10 = vpop.permute.xlu0 %293 }
  0xb6   :  { %vm428_vm2 = vcmp.eq.s32.totalorder %v294_v10, %v4447_v56  ;;  %vm429_vm3 = vcmp.eq.s32.totalorder %v297_v9, %v4447_v56 }
  0xb7   :  { %v4692_v14 = vsel %vm428_vm2, 1.0, %v5961_v0  ;;  %v4701_v17 = vsel %vm429_vm3, 1.0, %v5961_v0 }
  0xb8   :  { %6047 = vst [vmem:[#allocation28_spill] sm:$0xff] %v4692_v14  ;;  %3515 = vmatmul.mubr.msk.f32.gmra.mxu1 %vm1179_vm1, %v4689_v11  ;;  %6048 = vst [vmem:[#allocation29_spill] sm:$0xff] %v4701_v17 }
  0xb9   :  { %v303_v15 = vpop.permute.xlu1 %302  ;;  %3517 = vmatprep.mubr.msk.f32.mxu1 %vm1179_vm1, %v4692_v14  ;;  %v300_v16 = vpop.permute.xlu0 %299 }
  0xba   :  { %vm430_vm4 = vcmp.eq.s32.totalorder %v300_v16, %v4447_v56  ;;  %vm431_vm5 = vcmp.eq.s32.totalorder %v303_v15, %v4447_v56 }
  0xbb   :  { %v4704_v20 = vsel %vm430_vm4, 1.0, %v5961_v0  ;;  %v4714_v23 = vsel %vm431_vm5, 1.0, %v5961_v0 }
  0xbc   :  { %6049 = vst [vmem:[#allocation30_spill] sm:$0xff] %v4704_v20  ;;  %3518 = vmatmul.mubr.msk.f32.gmra.mxu1 %vm1179_vm1, %v4701_v17  ;;  %6050 = vst [vmem:[#allocation31_spill] sm:$0xff] %v4714_v23 }
  0xbd   :  { %v309_v21 = vpop.permute.xlu1 %308  ;;  %3520 = vmatprep.mubr.msk.f32.mxu1 %vm1179_vm1, %v4704_v20  ;;  %v306_v22 = vpop.permute.xlu0 %305 }
  0xbe   :  { %vm433_vm6 = vcmp.eq.s32.totalorder %v309_v21, %v4447_v56  ;;  %vm432_vm7 = vcmp.eq.s32.totalorder %v306_v22, %v4447_v56 }
  0xbf   :  { %v4717_v26 = vsel %vm433_vm6, 1.0, %v5961_v0  ;;  %v4720_v27 = vsel %vm432_vm7, 1.0, %v5961_v0 }
  0xc0   :  { %6051 = vst [vmem:[#allocation32_spill] sm:$0xff] %v4717_v26  ;;  %6052 = vst [vmem:[#allocation33_spill] sm:$0xff] %v4720_v27  ;;  %3521 = vmatmul.mubr.msk.f32.gmra.mxu1 %vm1179_vm1, %v4714_v23 }
  0xc1   :  { %v315_v32 = vpop.permute.xlu1 %314  ;;  %3523 = vmatprep.mubr.msk.f32.mxu1 %vm1179_vm1, %v4720_v27  ;;  %v312_v33 = vpop.permute.xlu0 %311 }
  0xc2   :  { %vm435_vm8 = vcmp.eq.s32.totalorder %v315_v32, %v4447_v56  ;;  %vm434_vm9 = vcmp.eq.s32.totalorder %v312_v33, %v4447_v56 }
  0xc3   :  { %v4733_v34 = vsel %vm435_vm8, 1.0, %v5961_v0  ;;  %v4736_v35 = vsel %vm434_vm9, 1.0, %v5961_v0 }
  0xc4   :  { %6053 = vst [vmem:[#allocation34_spill] sm:$0xff] %v4733_v34  ;;  %6054 = vst [vmem:[#allocation35_spill] sm:$0xff] %v4736_v35  ;;  %3524 = vmatmul.mubr.msk.f32.gmra.mxu1 %vm1179_vm1, %v4717_v26 }
  0xc5   :  { %v321_v40 = vpop.permute.xlu1 %320  ;;  %3526 = vmatprep.mubr.msk.f32.mxu1 %vm1179_vm1, %v4736_v35  ;;  %v318_v41 = vpop.permute.xlu0 %317 }
  0xc6   :  { %vm437_vm10 = vcmp.eq.s32.totalorder %v321_v40, %v4447_v56  ;;  %vm436_vm11 = vcmp.eq.s32.totalorder %v318_v41, %v4447_v56 }
  0xc7   :  { %v4749_v44 = vsel %vm437_vm10, 1.0, %v5961_v0  ;;  %v4752_v45 = vsel %vm436_vm11, 1.0, %v5961_v0 }
  0xc8   :  { %6055 = vst [vmem:[#allocation36_spill] sm:$0xff] %v4749_v44  ;;  %6056 = vst [vmem:[#allocation37_spill] sm:$0xff] %v4752_v45  ;;  %3527 = vmatmul.mubr.msk.f32.gmra.mxu1 %vm1179_vm1, %v4733_v34 }
  0xc9   :  { %v327_v52 = vpop.permute.xlu1 %326  ;;  %3529 = vmatprep.mubr.msk.f32.mxu1 %vm1179_vm1, %v4752_v45  ;;  %v324_v53 = vpop.permute.xlu0 %323 }
  0xca   :  { %vm439_vm12 = vcmp.eq.s32.totalorder %v327_v52, %v4447_v56  ;;  %vm438_vm13 = vcmp.eq.s32.totalorder %v324_v53, %v4447_v56 }
  0xcb   :  { %v4765_v57 = vsel %vm439_vm12, 1.0, %v5961_v0  ;;  %v4768_v58 = vsel %vm438_vm13, 1.0, %v5961_v0 }
  0xcc   :  { %6057 = vst [vmem:[#allocation38_spill] sm:$0xff] %v4765_v57  ;;  %6058 = vst [vmem:[#allocation39_spill] sm:$0xff] %v4768_v58  ;;  %3530 = vmatmul.mubr.msk.f32.gmra.mxu1 %vm1179_vm1, %v4749_v44 }
  0xcd   :  { %v333_v3 = vpop.permute.xlu1 %332  ;;  %3532 = vmatprep.mubr.msk.f32.mxu1 %vm1179_vm1, %v4768_v58  ;;  %v330_v4 = vpop.permute.xlu0 %329 }
  0xce   :  { %vm441_vm14 = vcmp.eq.s32.totalorder %v333_v3, %v4447_v56  ;;  %vm440_vm15 = vcmp.eq.s32.totalorder %v330_v4, %v4447_v56 }
  0xcf   :  { %v4781_v9 = vsel %vm441_vm14, 1.0, %v5961_v0  ;;  %v4784_v10 = vsel %vm440_vm15, 1.0, %v5961_v0 }
  0xd0   :  { %6059 = vst [vmem:[#allocation40_spill] sm:$0xff] %v4781_v9  ;;  %6060 = vst [vmem:[#allocation41_spill] sm:$0xff] %v4784_v10  ;;  %3533 = vmatmul.mubr.msk.f32.gmra.mxu1 %vm1179_vm1, %v4765_v57 }
  0xd1   :  { %v339_v21 = vpop.permute.xlu1 %338  ;;  %3535 = vmatprep.mubr.msk.f32.mxu1 %vm1179_vm1, %v4784_v10  ;;  %v336_v22 = vpop.permute.xlu0 %335 }
  0xd2   :  { %vm443_vm2 = vcmp.eq.s32.totalorder %v339_v21, %v4447_v56  ;;  %vm442_vm3 = vcmp.eq.s32.totalorder %v336_v22, %v4447_v56 }
  0xd3   :  { %v4797_v32 = vsel %vm443_vm2, 1.0, %v5961_v0  ;;  %v4800_v33 = vsel %vm442_vm3, 1.0, %v5961_v0 }
  0xd4   :  { %6061 = vst [vmem:[#allocation42_spill] sm:$0xff] %v4797_v32  ;;  %6062 = vst [vmem:[#allocation43_spill] sm:$0xff] %v4800_v33  ;;  %3536 = vmatmul.mubr.msk.f32.gmra.mxu1 %vm1179_vm1, %v4781_v9 }
  0xd5   :  { %v345_v52 = vpop.permute.xlu1 %344  ;;  %3538 = vmatprep.mubr.msk.f32.mxu1 %vm1179_vm1, %v4800_v33  ;;  %v342_v53 = vpop.permute.xlu0 %341 }
  0xd6   :  { %vm445_vm4 = vcmp.eq.s32.totalorder %v345_v52, %v4447_v56  ;;  %vm444_vm5 = vcmp.eq.s32.totalorder %v342_v53, %v4447_v56 }
  0xd7   :  { %v4813_v3 = vsel %vm445_vm4, 1.0, %v5961_v0  ;;  %v4816_v4 = vsel %vm444_vm5, 1.0, %v5961_v0 }
  0xd8   :  { %6063 = vst [vmem:[#allocation44_spill] sm:$0xff] %v4813_v3  ;;  %6064 = vst [vmem:[#allocation45_spill] sm:$0xff] %v4816_v4  ;;  %3539 = vmatmul.mubr.msk.f32.gmra.mxu1 %vm1179_vm1, %v4797_v32 }
  0xd9   :  { %v351_v40 = vpop.permute.xlu1 %350  ;;  %3541 = vmatprep.mubr.msk.f32.mxu1 %vm1179_vm1, %v4816_v4  ;;  %v348_v52 = vpop.permute.xlu0 %347 }
  0xda   :  { %vm447_vm6 = vcmp.eq.s32.totalorder %v351_v40, %v4447_v56  ;;  %vm446_vm7 = vcmp.eq.s32.totalorder %v348_v52, %v4447_v56 }
  0xdb   :  { %v4829_v53 = vsel %vm447_vm6, 1.0, %v5961_v0  ;;  %v4832_v21 = vsel %vm446_vm7, 1.0, %v5961_v0 }
  0xdc   :  { %6065 = vst [vmem:[#allocation46_spill] sm:$0xff] %v4829_v53  ;;  %6066 = vst [vmem:[#allocation47_spill] sm:$0xff] %v4832_v21  ;;  %3542 = vmatmul.mubr.msk.f32.gmra.mxu1 %vm1179_vm1, %v4813_v3 }
  0xdd   :  { %v357_v15 = vpop.permute.xlu1 %356  ;;  %3544 = vmatprep.mubr.msk.f32.mxu1 %vm1179_vm1, %v4832_v21  ;;  %v354_v40 = vpop.permute.xlu0 %353 }
  0xde   :  { %vm449_vm8 = vcmp.eq.s32.totalorder %v357_v15, %v4447_v56  ;;  %vm448_vm9 = vcmp.eq.s32.totalorder %v354_v40, %v4447_v56  ;;  %v4860_v40 = vpop.f32.mrf.mxu0 }
  0xdf   :  { %v4845_v52 = vsel %vm449_vm8, 1.0, %v5961_v0  ;;  %v4848_v22 = vsel %vm448_vm9, 1.0, %v5961_v0 }
  0xe0   :  { %3545 = vmatmul.mubr.msk.f32.gmra.mxu1 %vm1179_vm1, %v4829_v53 }
  0xe1   :  { %v363_v61 = vpop.permute.xlu1 %362  ;;  %3547 = vmatprep.mubr.msk.f32.mxu1 %vm1179_vm1, %v4848_v22  ;;  %v360_v15 = vpop.permute.xlu0 %359 }
  0xe2   :  { %vm451_vm10 = vcmp.eq.s32.totalorder %v363_v61, %v4447_v56  ;;  %vm450_vm11 = vcmp.eq.s32.totalorder %v360_v15, %v4447_v56  ;;  %v4874_v61 = vpop.f32.mrf.mxu0 }
  0xe3   :  { %v4863_v62 = vsel %vm451_vm10, 1.0, %v5961_v0  ;;  %v4866_v48 = vsel %vm450_vm11, 1.0, %v5961_v0 }
  0xe4   :  { %6067 = vst [vmem:[#allocation48_spill] sm:$0xff] %v4863_v62  ;;  %3548 = vmatmul.mubr.msk.f32.gmra.mxu1 %vm1179_vm1, %v4845_v52  ;;  %v4880_v28 = vpop.f32.mrf.mxu0 }
  0xe5   :  { %v369_v15 = vpop.permute.xlu1 %368  ;;  %3550 = vmatprep.mubr.msk.f32.mxu1 %vm1179_vm1, %v4866_v48  ;;  %v366_v39 = vpop.permute.xlu0 %365 }
  0xe6   :  { %vm453_vm12 = vcmp.eq.s32.totalorder %v369_v15, %v4447_v56  ;;  %vm452_vm13 = vcmp.eq.s32.totalorder %v366_v39, %v4447_v56  ;;  %v4894_v15 = vpop.f32.mrf.mxu0 }
  0xe7   :  { %v4883_v29 = vsel %vm453_vm12, 1.0, %v5961_v0  ;;  %v4886_v49 = vsel %vm452_vm13, 1.0, %v5961_v0 }
  0xe8   :  { %6068 = vst [vmem:[#allocation49_spill] sm:$0xff] %v4883_v29  ;;  %6069 = vst [vmem:[#allocation50_spill] sm:$0xff] %v4886_v49  ;;  %3551 = vmatmul.mubr.msk.f32.gmra.mxu1 %vm1179_vm1, %v4863_v62  ;;  %v4900_v0 = vpop.f32.mrf.mxu0 }
  0xe9   :  { %v375_v39 = vpop.permute.xlu1 %374  ;;  %3553 = vmatprep.mubr.msk.f32.mxu1 %vm1179_vm1, %v4886_v49  ;;  %v372_v16 = vpop.permute.xlu0 %371 }
  0xea   :  { %vm455_vm14 = vcmp.eq.s32.totalorder %v375_v39, %v4447_v56  ;;  %vm454_vm15 = vcmp.eq.s32.totalorder %v372_v16, %v4447_v56  ;;  %v4914_v39 = vpop.f32.mrf.mxu0 }
  0xeb   :  { %v4903_v46 = vsel %vm455_vm14, 1.0, %v6070_v38  ;;  %v4906_v41 = vsel %vm454_vm15, 1.0, %v6070_v38 }
  0xec   :  { %6071 = vst [vmem:[#allocation51_spill] sm:$0xff] %v4903_v46  ;;  %6072 = vst [vmem:[#allocation52_spill] sm:$0xff] %v4906_v41  ;;  %3554 = vmatmul.mubr.msk.f32.gmra.mxu1 %vm1179_vm1, %v4883_v29  ;;  %v4920_v42 = vpop.f32.mrf.mxu0 }
  0xed   :  { %v381_v16 = vpop.permute.xlu1 %380  ;;  %3556 = vmatprep.mubr.msk.f32.mxu1 %vm1179_vm1, %v4906_v41  ;;  %v378_v21 = vpop.permute.xlu0 %377 }
  0xee   :  { %vm457_vm2 = vcmp.eq.s32.totalorder %v381_v16, %v4447_v56  ;;  %vm456_vm3 = vcmp.eq.s32.totalorder %v378_v21, %v4447_v56  ;;  %v4934_v16 = vpop.f32.mrf.mxu0 }
  0xef   :  { %v4923_v53 = vsel %vm457_vm2, 1.0, %v6070_v38  ;;  %v4926_v43 = vsel %vm456_vm3, 1.0, %v6070_v38 }
  0xf0   :  { %6073 = vst [vmem:[#allocation53_spill] sm:$0xff] %v4923_v53  ;;  %6074 = vst [vmem:[#allocation54_spill] sm:$0xff] %v4926_v43  ;;  %3557 = vmatmul.mubr.msk.f32.gmra.mxu1 %vm1179_vm1, %v4903_v46  ;;  %v4940_v36 = vpop.f32.mrf.mxu0 }
  0xf1   :  { %v387_v21 = vpop.permute.xlu1 %386  ;;  %3559 = vmatprep.mubr.msk.f32.mxu1 %vm1179_vm1, %v4926_v43  ;;  %v384_v4 = vpop.permute.xlu0 %383 }
  0xf2   :  { %vm459_vm4 = vcmp.eq.s32.totalorder %v387_v21, %v4447_v56  ;;  %vm458_vm5 = vcmp.eq.s32.totalorder %v384_v4, %v4447_v56  ;;  %v4954_v21 = vpop.f32.mrf.mxu0 }
  0xf3   :  { %v4943_v3 = vsel %vm459_vm4, 1.0, %v6070_v38  ;;  %v4946_v37 = vsel %vm458_vm5, 1.0, %v6070_v38 }
  0xf4   :  { %6075 = vst [vmem:[#allocation55_spill] sm:$0xff] %v4943_v3  ;;  %6076 = vst [vmem:[#allocation56_spill] sm:$0xff] %v4946_v37  ;;  %3560 = vmatmul.mubr.msk.f32.gmra.mxu1 %vm1179_vm1, %v4923_v53  ;;  %v4960_v30 = vpop.f32.mrf.mxu0 }
  0xf5   :  { %v393_v4 = vpop.permute.xlu1 %392  ;;  %3562 = vmatprep.mubr.msk.f32.mxu1 %vm1179_vm1, %v4946_v37  ;;  %v390_v33 = vpop.permute.xlu0 %389 }
  0xf6   :  { %vm461_vm6 = vcmp.eq.s32.totalorder %v393_v4, %v4447_v56  ;;  %vm460_vm7 = vcmp.eq.s32.totalorder %v390_v33, %v4447_v56  ;;  %v4974_v4 = vpop.f32.mrf.mxu0 }
  0xf7   :  { %v4963_v32 = vsel %vm461_vm6, 1.0, %v6070_v38  ;;  %v4966_v31 = vsel %vm460_vm7, 1.0, %v6070_v38 }
  0xf8   :  { %6077 = vst [vmem:[#allocation57_spill] sm:$0xff] %v4963_v32  ;;  %6078 = vst [vmem:[#allocation58_spill] sm:$0xff] %v4966_v31  ;;  %3563 = vmatmul.mubr.msk.f32.gmra.mxu1 %vm1179_vm1, %v4943_v3  ;;  %v4980_v24 = vpop.f32.mrf.mxu0 }
  0xf9   :  { %v399_v33 = vpop.permute.xlu1 %398  ;;  %3565 = vmatprep.mubr.msk.f32.mxu1 %vm1179_vm1, %v4966_v31  ;;  %v396_v10 = vpop.permute.xlu0 %395 }
  0xfa   :  { %vm463_vm8 = vcmp.eq.s32.totalorder %v399_v33, %v4447_v56  ;;  %vm462_vm9 = vcmp.eq.s32.totalorder %v396_v10, %v4447_v56  ;;  %v4994_v33 = vpop.f32.mrf.mxu0 }
  0xfb   :  { %v4983_v9 = vsel %vm463_vm8, 1.0, %v6070_v38  ;;  %v4986_v25 = vsel %vm462_vm9, 1.0, %v6070_v38 }
  0xfc   :  { %6079 = vst [vmem:[#allocation59_spill] sm:$0xff] %v4983_v9  ;;  %6080 = vst [vmem:[#allocation60_spill] sm:$0xff] %v4986_v25  ;;  %3566 = vmatmul.mubr.msk.f32.gmra.mxu1 %vm1179_vm1, %v4963_v32  ;;  %v5000_v56 = vpop.f32.mrf.mxu0 }
  0xfd   :  { %3568 = vmatprep.mubr.msk.f32.mxu1 %vm1179_vm1, %v4986_v25 }
  0xfe   :  { %v5002_v10 = vpop.f32.mrf.mxu0 }
 0x100   :  { %3569 = vmatmul.mubr.msk.f32.gmra.mxu1 %vm1179_vm1, %v4983_v9  ;;  %v5004_v38 = vpop.f32.mrf.mxu0 }
 0x102   :  { %v5006_v57 = vpop.f32.mrf.mxu0 }
 0x104   :  { %v5008_v19 = vpop.f32.mrf.mxu0 }
 0x106   :  { %v5010_v58 = vpop.f32.mrf.mxu0 }
 0x108   :  { %v5012_v18 = vpop.f32.mrf.mxu0 }
 0x10a   :  { %v5014_v44 = vpop.f32.mrf.mxu0 }
 0x10c   :  { %v5016_v13 = vpop.f32.mrf.mxu0 }
 0x10e   :  { %v5018_v45 = vpop.f32.mrf.mxu0 }
 0x110   :  { %v5020_v12 = vpop.f32.mrf.mxu0 }
 0x112   :  { %v5022_v34 = vpop.f32.mrf.mxu0 }
 0x114   :  { %v5024_v5 = vpop.f32.mrf.mxu0 }
 0x116   :  { %v5026_v35 = vpop.f32.mrf.mxu0 }
 0x118   :  { %v5028_v23 = vpop.f32.mrf.mxu0 }
 0x11a   :  { %v5030_v9 = vpop.f32.mrf.mxu0 }
 0x11c   :  { %v5032_v7 = vpop.f32.mrf.mxu0 }
 0x11e   :  { %v5034_v20 = vpop.f32.mrf.mxu0 }
 0x120   :  { %v5038_v14 = vpop.f32.mrf.mxu0 }
 0x122   :  { %v5042_v53 = vpop.f32.mrf.mxu0 }
 0x144   :  { %v3477_v26 = vpop.f32.mrf.mxu1 }
 0x145   :  { %v1444_v25 = vadd.f32 %v3477_v26, %v4860_v40  ;;  %v5045_v40 = vpop.f32.mrf.mxu0 }
 0x146   :  { %v1438_v1 = vpop.f32.mrf.mxu1 }
 0x147   :  { %v3066_v27 = vmul.f32 -1.442695, %v1444_v25  ;;  %v1439_v17 = vadd.f32 %v1438_v1, %v4874_v61 }
 0x148   :  { %v3480_v32 = vpop.f32.mrf.mxu1 }
 0x149   :  { %3689 = vpow2.f32 %v3066_v27  ;;  %v3065_v31 = vmul.f32 -1.442695, %v1439_v17  ;;  %v1454_v11 = vadd.f32 %v3480_v32, %v4880_v28 }
 0x14a   :  { %v1448_v3 = vpop.f32.mrf.mxu1 }
 0x14b   :  { %3691 = vpow2.f32 %v3065_v31  ;;  %v3068_v8 = vmul.f32 -1.442695, %v1454_v11  ;;  %v1449_v37 = vadd.f32 %v1448_v3, %v4894_v15  ;;  %v5049_v3 = vpop.f32.mrf.mxu0 }
 0x14c   :  { %v3483_v6 = vpop.f32.mrf.mxu1 }
 0x14d   :  { %3693 = vpow2.f32 %v3068_v8  ;;  %v3067_v26 = vmul.f32 -1.442695, %v1449_v37  ;;  %v1464_v25 = vadd.f32 %v3483_v6, %v4900_v0  ;;  %v5052_v15 = vpop.f32.mrf.mxu0 }
 0x14e   :  { %v1458_v1 = vpop.f32.mrf.mxu1 }
 0x14f   :  { %3695 = vpow2.f32 %v3067_v26  ;;  %v3070_v27 = vmul.f32 -1.442695, %v1464_v25  ;;  %v1459_v17 = vadd.f32 %v1458_v1, %v4914_v39 }
 0x150   :  { %v3486_v28 = vpop.f32.mrf.mxu1 }
 0x151   :  { %3697 = vpow2.f32 %v3070_v27  ;;  %v3069_v31 = vmul.f32 -1.442695, %v1459_v17  ;;  %v1474_v11 = vadd.f32 %v3486_v28, %v4920_v42 }
 0x152   :  { %v1468_v32 = vpop.f32.mrf.mxu1 }
 0x153   :  { %v3072_v61 = vmul.f32 -1.442695, %v1474_v11  ;;  %v1469_v37 = vadd.f32 %v1468_v32, %v4934_v16  ;;  %3699 = vpow2.f32 %v3069_v31  ;;  %v5055_v11 = vpop.f32.mrf.mxu0 }
 0x154   :  { %v3489_v8 = vpop.f32.mrf.mxu1 }
 0x155   :  { %3701 = vpow2.f32 %v3072_v61  ;;  %v3071_v39 = vmul.f32 -1.442695, %v1469_v37  ;;  %v1484_v1 = vadd.f32 %v3489_v8, %v4940_v36  ;;  %v5058_v36 = vpop.f32.mrf.mxu0 }
 0x156   :  { %v3690_v0 = vpop.eup %3689  ;;  %v1478_v6 = vpop.f32.mrf.mxu1 }
 0x157   :  { %v1950_v26 = vadd.f32 1.0, %v3690_v0  ;;  %v3074_v32 = vmul.f32 -1.442695, %v1484_v1  ;;  %v1479_v2 = vadd.f32 %v1478_v6, %v4954_v21  ;;  %v5062_v63 = vpop.f32.mrf.mxu0 }
 0x158   :  { %v3692_v25 = vpop.eup %3691  ;;  %v3492_v27 = vpop.f32.mrf.mxu1 }
 0x159   :  { %3703 = vrcp.f32 %v1950_v26  ;;  %v1949_v42 = vadd.f32 1.0, %v3692_v25  ;;  %v3073_v8 = vmul.f32 -1.442695, %v1479_v2  ;;  %v1494_v26 = vadd.f32 %v3492_v27, %v4960_v30  ;;  %v5068_v2 = vld [vmem:[%s5958_s4] ss:$0 sm:$0xff] }
 0x15a   :  { %v3694_v17 = vpop.eup %3693  ;;  %v1488_v28 = vpop.f32.mrf.mxu1 }
 0x15b   :  { %3705 = vrcp.f32 %v1949_v42  ;;  %v1952_v16 = vadd.f32 1.0, %v3694_v17  ;;  %v3076_v6 = vmul.f32 -1.442695, %v1494_v26 }
 0x15c   :  { %v3696_v31 = vpop.eup %3695  ;;  %3707 = vpow2.f32 %v3071_v39  ;;  %v3495_v0 = vpop.f32.mrf.mxu1 }
 0x15d   :  { %3709 = vrcp.f32 %v1952_v16  ;;  %v1951_v61 = vadd.f32 1.0, %v3696_v31  ;;  %v1489_v16 = vadd.f32 %v1488_v28, %v4974_v4  ;;  %v1504_v4 = vadd.f32 %v3495_v0, %v4980_v24 }
 0x15e   :  { %v3698_v37 = vpop.eup %3697  ;;  %v1498_v43 = vpop.f32.mrf.mxu1  ;;  %3711 = vpow2.f32 %v3074_v32 }
 0x15f   :  { %3713 = vrcp.f32 %v1951_v61  ;;  %v1954_v42 = vadd.f32 1.0, %v3698_v37  ;;  %v5070_v61 = vpop.f32.mrf.mxu0  ;;  %v3075_v26 = vmul.f32 -1.442695, %v1489_v16  ;;  %v1499_v16 = vadd.f32 %v1498_v43, %v4994_v33 }
 0x160   :  { %v3498_v25 = vpop.f32.mrf.mxu1  ;;  %v3700_v39 = vpop.eup %3699  ;;  %3715 = vpow2.f32 %v3073_v8 }
 0x161   :  { %v1514_v17 = vadd.f32 %v3498_v25, %v5000_v56  ;;  %3717 = vrcp.f32 %v1954_v42  ;;  %v1953_v27 = vadd.f32 1.0, %v3700_v39  ;;  %v5080_v60 = vpop.f32.mrf.mxu0 }
 0x162   :  { %v1508_v1 = vpop.f32.mrf.mxu1  ;;  %v3702_v30 = vpop.eup %3701 }
 0x163   :  { %v3080_v21 = vmul.f32 -1.442695, %v1514_v17  ;;  %v1956_v17 = vadd.f32 1.0, %v3702_v30 }
 0x164   :  { %v3501_v31 = vpop.f32.mrf.mxu1 }
 0x165   :  { %3719 = vpow2.f32 %v3080_v21 }
 0x166   :  { %v3704_v32 = vpop.eup %3703  ;;  %v1518_v56 = vpop.f32.mrf.mxu1  ;;  %3721 = vpow2.f32 %v3076_v6  ;;  %v3078_v6 = vmul.f32 -1.442695, %v1504_v4  ;;  %v3077_v4 = vmul.f32 -1.442695, %v1499_v16 }
 0x167   :  { %v2149_v37 = vmul.f32 %v3704_v32, %v5068_v2  ;;  %3723 = vrcp.f32 %v1953_v27 }
 0x168   :  { %v3706_v8 = vpop.eup %3705  ;;  %v5074_v28 = vpop.f32.mrf.mxu1  ;;  %3725 = vpow2.f32 %v3075_v26  ;;  %v1509_v26 = vadd.f32 %v1508_v1, %v5002_v10 }
 0x169   :  { %v3708_v25 = vpop.eup %3707  ;;  %v2215_v42 = vsel %vm72_vm0, %v2149_v37, 0.0  ;;  %v2148_v46 = vmul.f32 %v3706_v8, %v5068_v2  ;;  %3727 = vrcp.f32 %v1956_v17  ;;  %v5089_v8 = vpop.f32.mrf.mxu0 }
 0x16a   :  { %v3710_v39 = vpop.eup %3709  ;;  %2216 = vadd.xlane.f32.xlu1 %v2215_v42  ;;  %v5077_v21 = vpop.f32.mrf.mxu1  ;;  %v1955_v27 = vadd.f32 1.0, %v3708_v25  ;;  %3729 = vpow2.f32 %v3078_v6  ;;  %v3079_v29 = vmul.f32 -1.442695, %v1509_v26  ;;  %v1524_v6 = vadd.f32 %v3501_v31, %v5004_v38 }
 0x16b   :  { %v3712_v0 = vpop.eup %3711  ;;  %v2212_v30 = vsel %vm72_vm0, %v2148_v46, 0.0  ;;  %v2151_v32 = vmul.f32 %v3710_v39, %v5068_v2  ;;  %v5098_v41 = vpop.f32.mrf.mxu0  ;;  %v1519_v38 = vadd.f32 %v1518_v56, %v5006_v57 }
 0x16c   :  { %v5083_v24 = vpop.f32.mrf.mxu1  ;;  %v3714_v37 = vpop.eup %3713  ;;  %3731 = vrcp.f32 %v1955_v27  ;;  %v1958_v17 = vadd.f32 1.0, %v3712_v0 }
 0x16d   :  { %v3716_v33 = vpop.eup %3715  ;;  %v2221_v25 = vsel %vm72_vm0, %v2151_v32, 0.0  ;;  %v2150_v46 = vmul.f32 %v3714_v37, %v5068_v2  ;;  %3733 = vpow2.f32 %v3077_v4  ;;  %v5107_v55 = vpop.f32.mrf.mxu0 }
 0x16e   :  { %2213 = vadd.xlane.f32.xlu1 %v2212_v30  ;;  %v5087_v42 = vpop.f32.mrf.mxu1  ;;  %v3718_v39 = vpop.eup %3717  ;;  %v1957_v10 = vadd.f32 1.0, %v3716_v33  ;;  %3735 = vrcp.f32 %v1958_v17 }
 0x16f   :  { %v2218_v27 = vsel %vm72_vm0, %v2150_v46, 0.0  ;;  %v2153_v32 = vmul.f32 %v3718_v39, %v5068_v2  ;;  %v1539_v62 = vadd.f32 %v5087_v42, %v5014_v44 }
 0x170   :  { %v5092_v43 = vpop.f32.mrf.mxu1 }
 0x171   :  { %v2227_v33 = vsel %vm72_vm0, %v2153_v32, 0.0 }
 0x172   :  { %2222 = vadd.xlane.f32.xlu1 %v2221_v25  ;;  %v5096_v30 = vpop.f32.mrf.mxu1  ;;  %v3720_v59 = vpop.eup %3719 }
 0x173   :  { %v1964_v1 = vadd.f32 1.0, %v3720_v59  ;;  %v3722_v0 = vpop.eup %3721  ;;  %v3082_v59 = vmul.f32 -1.442695, %v1524_v6 }
 0x174   :  { %v5101_v16 = vpop.f32.mrf.mxu1  ;;  %v3724_v37 = vpop.eup %3723  ;;  %v1960_v4 = vadd.f32 1.0, %v3722_v0 }
 0x175   :  { %3737 = vrcp.f32 %v1964_v1  ;;  %v3726_v26 = vpop.eup %3725  ;;  %v2152_v17 = vmul.f32 %v3724_v37, %v5068_v2  ;;  %v5116_v1 = vpop.f32.mrf.mxu0 }
 0x176   :  { %2219 = vadd.xlane.f32.xlu1 %v2218_v27  ;;  %v5105_v25 = vpop.f32.mrf.mxu1  ;;  %3739 = vpow2.f32 %v3079_v29  ;;  %v3728_v46 = vpop.eup %3727  ;;  %v1534_v29 = vadd.f32 %v5074_v28, %v5008_v19  ;;  %v1959_v6 = vadd.f32 1.0, %v3726_v26  ;;  %v1529_v19 = vadd.f32 %v5077_v21, %v5010_v58 }
 0x177   :  { %3741 = vrcp.f32 %v1957_v10  ;;  %v3081_v10 = vmul.f32 -1.442695, %v1519_v38  ;;  %v3730_v56 = vpop.eup %3729  ;;  %v2224_v0 = vsel %vm72_vm0, %v2152_v17, 0.0  ;;  %v2155_v27 = vmul.f32 %v3728_v46, %v5068_v2 }
 0x178   :  { %v5110_v31 = vpop.f32.mrf.mxu1  ;;  %3743 = vpow2.f32 %v3082_v59  ;;  %v3084_v49 = vmul.f32 -1.442695, %v1534_v29  ;;  %v1962_v28 = vadd.f32 1.0, %v3730_v56  ;;  %v3083_v21 = vmul.f32 -1.442695, %v1529_v19 }
 0x179   :  { %3745 = vrcp.f32 %v1960_v4  ;;  %v3732_v32 = vpop.eup %3731  ;;  %v2233_v4 = vsel %vm72_vm0, %v2155_v27, 0.0 }
 0x17a   :  { %2228 = vadd.xlane.f32.xlu1 %v2227_v33  ;;  %v5114_v39 = vpop.f32.mrf.mxu1  ;;  %v5126_v33 = vpop.f32.mrf.mxu0  ;;  %3747 = vpow2.f32 %v3081_v10  ;;  %v2154_v17 = vmul.f32 %v3732_v32, %v5068_v2 }
 0x17b   :  { %v3734_v38 = vpop.eup %3733  ;;  %3749 = vrcp.f32 %v1959_v6 }
 0x17c   :  { %v5120_v57 = vpop.f32.mrf.mxu1  ;;  %v3736_v46 = vpop.eup %3735  ;;  %3751 = vpow2.f32 %v3084_v49 }
 0x17d   :  { %v5137_v54 = vpop.f32.mrf.mxu0  ;;  %3753 = vrcp.f32 %v1962_v28 }
 0x17e   :  { %2225 = vadd.xlane.f32.xlu1 %v2224_v0  ;;  %v5124_v37 = vpop.f32.mrf.mxu1  ;;  %v1544_v0 = vadd.f32 %v5083_v24, %v5012_v18  ;;  %v2230_v18 = vsel %vm72_vm0, %v2154_v17, 0.0  ;;  %v2157_v24 = vmul.f32 %v3736_v46, %v5068_v2  ;;  %v1554_v17 = vadd.f32 %v5092_v43, %v5016_v13 }
 0x17f   :  { %v5146_v28 = vpop.f32.mrf.mxu0 }
 0x180   :  { %v3522_v59 = vpop.f32.mrf.mxu1 }
 0x181   :  { %v1594_v26 = vadd.f32 %v3522_v59, %v5032_v7  ;;  %v1961_v7 = vadd.f32 1.0, %v3734_v38 }
 0x182   :  { %2234 = vadd.xlane.f32.xlu1 %v2233_v4  ;;  %v5135_v29 = vpop.f32.mrf.mxu1  ;;  %v3738_v58 = vpop.eup %3737  ;;  %v3086_v4 = vmul.f32 -1.442695, %v1544_v0 }
 0x183   :  { %v3096_v10 = vmul.f32 -1.442695, %v1594_v26  ;;  %v3740_v56 = vpop.eup %3739  ;;  %v2163_v27 = vmul.f32 %v3738_v58, %v5068_v2 }
 0x184   :  { %v3525_v6 = vpop.f32.mrf.mxu1  ;;  %v3742_v32 = vpop.eup %3741  ;;  %v1963_v26 = vadd.f32 1.0, %v3740_v56 }
 0x185   :  { %v1604_v59 = vadd.f32 %v3525_v6, %v5038_v14  ;;  %3755 = vpow2.f32 %v3096_v10  ;;  %v2257_v49 = vsel %vm72_vm0, %v2163_v27, 0.0  ;;  %v2156_v44 = vmul.f32 %v3742_v32, %v5068_v2  ;;  %v3744_v42 = vpop.eup %3743 }
 0x186   :  { %2231 = vadd.xlane.f32.xlu1 %v2230_v18  ;;  %v1598_v19 = vpop.f32.mrf.mxu1  ;;  %3757 = vpow2.f32 %v3083_v21  ;;  %2258 = vadd.xlane.f32.xlu0 %v2257_v49  ;;  %v2239_v10 = vsel %vm72_vm0, %v2157_v24, 0.0  ;;  %v3746_v21 = vpop.eup %3745  ;;  %v3085_v6 = vmul.f32 -1.442695, %v1539_v62  ;;  %v1966_v27 = vadd.f32 1.0, %v3744_v42 }
 0x187   :  { %v3098_v38 = vmul.f32 -1.442695, %v1604_v59  ;;  %v1599_v14 = vadd.f32 %v1598_v19, %v5042_v53  ;;  %3759 = vrcp.f32 %v1961_v7  ;;  %v1549_v53 = vadd.f32 %v5096_v30, %v5018_v45  ;;  %v5156_v7 = vpop.f32.mrf.mxu0  ;;  %v3748_v18 = vpop.eup %3747 }
 0x188   :  { %v3528_v46 = vpop.f32.mrf.mxu1  ;;  %v3088_v32 = vmul.f32 -1.442695, %v1554_v17  ;;  %v2236_v59 = vsel %vm72_vm0, %v2156_v44, 0.0  ;;  %v2159_v45 = vmul.f32 %v3746_v21, %v5068_v2  ;;  %v3750_v30 = vpop.eup %3749  ;;  %v1965_v17 = vadd.f32 1.0, %v3748_v18 }
 0x189   :  { %3761 = vpow2.f32 %v3098_v38  ;;  %v3097_v0 = vmul.f32 -1.442695, %v1599_v14  ;;  %v1614_v58 = vadd.f32 %v3528_v46, %v5045_v40  ;;  %v5162_v19 = vpop.f32.mrf.mxu0 }
 0x18a   :  { %3763 = vpow2.f32 %v3086_v4  ;;  %2240 = vadd.xlane.f32.xlu1 %v2239_v10  ;;  %v1608_v56 = vpop.f32.mrf.mxu1  ;;  %v3087_v4 = vmul.f32 -1.442695, %v1549_v53  ;;  %v2245_v42 = vsel %vm72_vm0, %v2159_v45, 0.0 }
 0x18b   :  { %3765 = vpow2.f32 %v3097_v0  ;;  %v3100_v13 = vmul.f32 -1.442695, %v1614_v58  ;;  %v1609_v43 = vadd.f32 %v1608_v56, %v5049_v3  ;;  %v1564_v3 = vadd.f32 %v5101_v16, %v5020_v12  ;;  %v5170_v16 = vpop.f32.mrf.mxu0 }
 0x18c   :  { %3767 = vrcp.f32 %v1963_v26  ;;  %v3531_v40 = vpop.f32.mrf.mxu1  ;;  %v3752_v26 = vpop.eup %3751  ;;  %v2158_v0 = vmul.f32 %v3750_v30, %v5068_v2 }
 0x18d   :  { %3769 = vpow2.f32 %v3100_v13  ;;  %v3099_v62 = vmul.f32 -1.442695, %v1609_v43  ;;  %v1624_v24 = vadd.f32 %v3531_v40, %v5052_v15  ;;  %v3754_v46 = vpop.eup %3753  ;;  %v5175_v18 = vpop.f32.mrf.mxu0 }
 0x18e   :  { %3771 = vpow2.f32 %v3085_v6  ;;  %2237 = vadd.xlane.f32.xlu1 %v2236_v59  ;;  %v1618_v49 = vpop.f32.mrf.mxu1  ;;  %v1968_v6 = vadd.f32 1.0, %v3752_v26  ;;  %v2161_v13 = vmul.f32 %v3754_v46, %v5068_v2 }
 0x18f   :  { %3773 = vpow2.f32 %v3099_v62  ;;  %v3102_v38 = vmul.f32 -1.442695, %v1624_v24  ;;  %v1619_v14 = vadd.f32 %v1618_v49, %v5055_v11  ;;  %v3090_v11 = vmul.f32 -1.442695, %v1564_v3 }
 0x190   :  { %3775 = vrcp.f32 %v1966_v27  ;;  %v3534_v15 = vpop.f32.mrf.mxu1  ;;  %v1559_v24 = vadd.f32 %v5105_v25, %v5022_v34  ;;  %v5182_v34 = vpop.f32.mrf.mxu0 }
 0x191   :  { %3777 = vpow2.f32 %v3088_v32  ;;  %v3101_v44 = vmul.f32 -1.442695, %v1619_v14  ;;  %v1634_v58 = vadd.f32 %v3534_v15, %v5058_v36  ;;  %v2242_v36 = vsel %vm72_vm0, %v2158_v0, 0.0 }
 0x192   :  { %3779 = vpow2.f32 %v3102_v38  ;;  %2246 = vadd.xlane.f32.xlu1 %v2245_v42  ;;  %v1628_v12 = vpop.f32.mrf.mxu1  ;;  %v3756_v10 = vpop.eup %3755  ;;  %v1574_v42 = vadd.f32 %v5110_v31, %v5024_v5 }
 0x193   :  { %3781 = vpow2.f32 %v3087_v4  ;;  %v3758_v21 = vpop.eup %3757  ;;  %v1980_v53 = vadd.f32 1.0, %v3756_v10  ;;  %v1629_v27 = vadd.f32 %v1628_v12, %v5062_v63  ;;  %v3104_v40 = vmul.f32 -1.442695, %v1634_v58  ;;  %v5193_v31 = vpop.f32.mrf.mxu0 }
 0x194   :  { %3783 = vrcp.f32 %v1965_v17  ;;  %v3537_v56 = vpop.f32.mrf.mxu1  ;;  %v3760_v43 = vpop.eup %3759  ;;  %v1967_v4 = vadd.f32 1.0, %v3758_v21  ;;  %v2251_v63 = vsel %vm72_vm0, %v2161_v13, 0.0 }
 0x195   :  { %3785 = vpow2.f32 %v3101_v44  ;;  %v2160_v3 = vmul.f32 %v3760_v43, %v5068_v2  ;;  %v3103_v26 = vmul.f32 -1.442695, %v1629_v27  ;;  %v1644_v17 = vadd.f32 %v3537_v56, %v5070_v61 }
 0x196   :  { %v3762_v32 = vpop.eup %3761  ;;  %3787 = vrcp.f32 %v1980_v53  ;;  %2243 = vadd.xlane.f32.xlu1 %v2242_v36  ;;  %v1638_v59 = vpop.f32.mrf.mxu1  ;;  %v3089_v44 = vmul.f32 -1.442695, %v1559_v24  ;;  %v3092_v27 = vmul.f32 -1.442695, %v1574_v42  ;;  %v1569_v36 = vadd.f32 %v5114_v39, %v5026_v35 }
 0x197   :  { %v3764_v62 = vpop.eup %3763  ;;  %3789 = vpow2.f32 %v3090_v11  ;;  %v1982_v45 = vadd.f32 1.0, %v3762_v32  ;;  %v2248_v61 = vsel %vm72_vm0, %v2160_v3, 0.0  ;;  %v3106_v21 = vmul.f32 -1.442695, %v1644_v17  ;;  %v5204_v35 = vpop.f32.mrf.mxu0 }
 0x198   :  { %v3766_v30 = vpop.eup %3765  ;;  %3791 = vrcp.f32 %v1968_v6  ;;  %v3540_v49 = vpop.f32.mrf.mxu1  ;;  %v1970_v12 = vadd.f32 1.0, %v3764_v62  ;;  %v1639_v6 = vadd.f32 %v1638_v59, %v5080_v60 }
 0x199   :  { %v3768_v38 = vpop.eup %3767  ;;  %3793 = vrcp.f32 %v1982_v45  ;;  %v1981_v14 = vadd.f32 1.0, %v3766_v30  ;;  %v1654_v45 = vadd.f32 %v3540_v49, %v5089_v8 }
 0x19a   :  { %v3770_v15 = vpop.eup %3769  ;;  %3795 = vpow2.f32 %v3104_v40  ;;  %2252 = vadd.xlane.f32.xlu1 %v2251_v63  ;;  %v1648_v46 = vpop.f32.mrf.mxu1  ;;  %v2162_v53 = vmul.f32 %v3768_v38, %v5068_v2  ;;  %v3105_v24 = vmul.f32 -1.442695, %v1639_v6  ;;  %v3091_v38 = vmul.f32 -1.442695, %v1569_v36 }
 0x19b   :  { %v3772_v25 = vpop.eup %3771  ;;  %3797 = vrcp.f32 %v1981_v14  ;;  %v1984_v0 = vadd.f32 1.0, %v3770_v15  ;;  %v1584_v14 = vadd.f32 %v5120_v57, %v5028_v23  ;;  %v1649_v42 = vadd.f32 %v1648_v46, %v5098_v41 }
 0x19c   :  { %v3774_v58 = vpop.eup %3773  ;;  %3799 = vrcp.f32 %v1967_v4  ;;  %v5186_v10 = vpop.f32.mrf.mxu1  ;;  %v1969_v40 = vadd.f32 1.0, %v3772_v25  ;;  %v2254_v30 = vsel %vm72_vm0, %v2162_v53, 0.0  ;;  %v1579_v6 = vadd.f32 %v5124_v37, %v5030_v9 }
 0x19d   :  { %v3776_v11 = vpop.eup %3775  ;;  %3801 = vpow2.f32 %v3103_v26  ;;  %v1983_v13 = vadd.f32 1.0, %v3774_v58  ;;  %v3107_v36 = vmul.f32 -1.442695, %v1649_v42 }
 0x19e   :  { %v3778_v56 = vpop.eup %3777  ;;  %3803 = vrcp.f32 %v1984_v0  ;;  %2249 = vadd.xlane.f32.xlu1 %v2248_v61  ;;  %v5191_v5 = vpop.f32.mrf.mxu1  ;;  %v2165_v59 = vmul.f32 %v3776_v11, %v5068_v2 }
 0x19f   :  { %v3780_v43 = vpop.eup %3779  ;;  %3805 = vpow2.f32 %v3089_v44  ;;  %v1972_v17 = vadd.f32 1.0, %v3778_v56  ;;  %v3108_v44 = vmul.f32 -1.442695, %v1654_v45  ;;  %v5217_v61 = vpop.f32.mrf.mxu0 }
 0x1a0   :  { %v3782_v32 = vpop.eup %3781  ;;  %3807 = vrcp.f32 %v1970_v12  ;;  %v5197_v60 = vpop.f32.mrf.mxu1  ;;  %v1986_v63 = vadd.f32 1.0, %v3780_v43  ;;  %v2263_v0 = vsel %vm72_vm0, %v2165_v59, 0.0 }
 0x1a1   :  { %v3784_v62 = vpop.eup %3783  ;;  %3809 = vpow2.f32 %v3106_v21  ;;  %v3094_v21 = vmul.f32 -1.442695, %v1584_v14  ;;  %v1971_v53 = vadd.f32 1.0, %v3782_v32 }
 0x1a2   :  { %v3786_v4 = vpop.eup %3785  ;;  %3811 = vrcp.f32 %v1983_v13  ;;  %2255 = vadd.xlane.f32.xlu1 %v2254_v30  ;;  %v5202_v3 = vpop.f32.mrf.mxu1  ;;  %v2164_v15 = vmul.f32 %v3784_v62, %v5068_v2  ;;  %v3093_v30 = vmul.f32 -1.442695, %v1579_v6 }
 0x1a3   :  { %v3788_v39 = vpop.eup %3787  ;;  %3813 = vpow2.f32 %v3092_v27  ;;  %v1985_v12 = vadd.f32 1.0, %v3786_v4  ;;  %v1589_v4 = vadd.f32 %v5135_v29, %v5034_v20 }
 0x1a4   :  { %v3790_v26 = vpop.eup %3789  ;;  %3815 = vrcp.f32 %v1969_v40  ;;  %v5208_v8 = vpop.f32.mrf.mxu1  ;;  %v2179_v49 = vmul.f32 %v3788_v39, %v5068_v2  ;;  %v2260_v13 = vsel %vm72_vm0, %v2164_v15, 0.0  ;;  %v1664_v40 = vadd.f32 %v5186_v10, %v5107_v55 }
 0x1a5   :  { %v3792_v25 = vpop.eup %3791  ;;  %3817 = vpow2.f32 %v3105_v24  ;;  %v5232_v24 = vpop.f32.mrf.mxu0  ;;  %v1974_v10 = vadd.f32 1.0, %v3790_v26 }
 0x1a6   :  { %v3794_v58 = vpop.eup %3793  ;;  %3819 = vrcp.f32 %v1986_v63  ;;  %2264 = vadd.xlane.f32.xlu1 %v2263_v0  ;;  %v2305_v23 = vsel %vm72_vm0, %v2179_v49, 0.0  ;;  %v5215_v57 = vpop.f32.mrf.mxu1  ;;  %v2167_v43 = vmul.f32 %v3792_v25, %v5068_v2  ;;  %v3110_v14 = vmul.f32 -1.442695, %v1664_v40 }
 0x1a7   :  { %v3796_v11 = vpop.eup %3795  ;;  %3821 = vpow2.f32 %v3091_v38  ;;  %2306 = vadd.xlane.f32.xlu0 %v2305_v23  ;;  %v2181_v41 = vmul.f32 %v3794_v58, %v5068_v2  ;;  %v3095_v0 = vmul.f32 -1.442695, %v1589_v4 }
 0x1a8   :  { %v3798_v46 = vpop.eup %3797  ;;  %3823 = vrcp.f32 %v1972_v17  ;;  %v5222_v56 = vpop.f32.mrf.mxu1  ;;  %v1988_v59 = vadd.f32 1.0, %v3796_v11  ;;  %v2269_v39 = vsel %vm72_vm0, %v2167_v43, 0.0  ;;  %v1659_v17 = vadd.f32 %v5191_v5, %v5116_v1 }
 0x1a9   :  { %v3800_v27 = vpop.eup %3799  ;;  %3825 = vpow2.f32 %v3108_v44  ;;  %v2311_v9 = vsel %vm72_vm0, %v2181_v41, 0.0  ;;  %v2180_v32 = vmul.f32 %v3798_v46, %v5068_v2  ;;  %v5246_v44 = vpop.f32.mrf.mxu0 }
 0x1aa   :  { %v3802_v37 = vpop.eup %3801  ;;  %3827 = vrcp.f32 %v1985_v12  ;;  %2261 = vadd.xlane.f32.xlu1 %v2260_v13  ;;  %v5229_v62 = vpop.f32.mrf.mxu1  ;;  %v2166_v49 = vmul.f32 %v3800_v27, %v5068_v2  ;;  %v3109_v11 = vmul.f32 -1.442695, %v1659_v17 }
 0x1ab   :  { %v3804_v45 = vpop.eup %3803  ;;  %3829 = vpow2.f32 %v3094_v21  ;;  %2312 = vadd.xlane.f32.xlu0 %v2311_v9  ;;  %v1987_v25 = vadd.f32 1.0, %v3802_v37  ;;  %v2308_v20 = vsel %vm72_vm0, %v2180_v32, 0.0  ;;  %v1674_v21 = vadd.f32 %v5197_v60, %v5126_v33  ;;  %v5258_v27 = vpop.f32.mrf.mxu0 }
 0x1ac   :  { %v3806_v55 = vpop.eup %3805  ;;  %3831 = vrcp.f32 %v1971_v53  ;;  %v5236_v63 = vpop.f32.mrf.mxu1  ;;  %v2183_v26 = vmul.f32 %v3804_v45, %v5068_v2  ;;  %v2266_v6 = vsel %vm72_vm0, %v2166_v49, 0.0  ;;  %v1669_v32 = vadd.f32 %v5202_v3, %v5137_v54 }
 0x1ad   :  { %v3808_v38 = vpop.eup %3807  ;;  %3833 = vpow2.f32 %v3107_v36  ;;  %v1973_v1 = vadd.f32 1.0, %v3806_v55 }
 0x1ae   :  { %v3810_v15 = vpop.eup %3809  ;;  %3835 = vrcp.f32 %v1988_v59  ;;  %2270 = vadd.xlane.f32.xlu1 %v2269_v39  ;;  %v5243_v29 = vpop.f32.mrf.mxu1  ;;  %v2169_v12 = vmul.f32 %v3808_v38, %v5068_v2  ;;  %v2317_v53 = vsel %vm72_vm0, %v2183_v26, 0.0  ;;  %v3112_v59 = vmul.f32 -1.442695, %v1674_v21 }
 0x1af   :  { %v3812_v42 = vpop.eup %3811  ;;  %3837 = vpow2.f32 %v3093_v30  ;;  %2309 = vadd.xlane.f32.xlu0 %v2308_v20  ;;  %v1990_v46 = vadd.f32 1.0, %v3810_v15  ;;  %v5270_v38 = vpop.f32.mrf.mxu0  ;;  %v1684_v20 = vadd.f32 %v5208_v8, %v5146_v28  ;;  %v1679_v28 = vadd.f32 %v5215_v57, %v5156_v7 }
 0x1b0   :  { %v3814_v58 = vpop.eup %3813  ;;  %3839 = vrcp.f32 %v1974_v10  ;;  %v5248_v5 = vpop.f32.mrf.mxu1  ;;  %v2182_v43 = vmul.f32 %v3812_v42, %v5068_v2  ;;  %v2275_v9 = vsel %vm72_vm0, %v2169_v12, 0.0 }
 0x1b1   :  { %v3816_v23 = vpop.eup %3815  ;;  %3841 = vpow2.f32 %v3110_v14  ;;  %v1976_v33 = vadd.f32 1.0, %v3814_v58  ;;  %v5281_v12 = vpop.f32.mrf.mxu0 }
 0x1b2   :  { %v3818_v41 = vpop.eup %3817  ;;  %3843 = vrcp.f32 %v1987_v25  ;;  %2267 = vadd.xlane.f32.xlu1 %v2266_v6  ;;  %v5255_v13 = vpop.f32.mrf.mxu1  ;;  %v2168_v45 = vmul.f32 %v3816_v23, %v5068_v2  ;;  %v2314_v55 = vsel %vm72_vm0, %v2182_v43, 0.0  ;;  %v3111_v25 = vmul.f32 -1.442695, %v1669_v32 }
 0x1b3   :  { %v3820_v36 = vpop.eup %3819  ;;  %3845 = vpow2.f32 %v3095_v0  ;;  %2318 = vadd.xlane.f32.xlu0 %v2317_v53  ;;  %v1989_v4 = vadd.f32 1.0, %v3818_v41  ;;  %v3114_v53 = vmul.f32 -1.442695, %v1684_v20 }
 0x1b4   :  { %v3822_v40 = vpop.eup %3821  ;;  %3847 = vrcp.f32 %v1973_v1  ;;  %v5260_v60 = vpop.f32.mrf.mxu1  ;;  %v2185_v39 = vmul.f32 %v3820_v36, %v5068_v2  ;;  %v2272_v26 = vsel %vm72_vm0, %v2168_v45, 0.0  ;;  %v3113_v45 = vmul.f32 -1.442695, %v1679_v28 }
 0x1b5   :  { %v3824_v37 = vpop.eup %3823  ;;  %3849 = vpow2.f32 %v3109_v11  ;;  %v1975_v49 = vadd.f32 1.0, %v3822_v40 }
 0x1b6   :  { %v3826_v30 = vpop.eup %3825  ;;  %3851 = vrcp.f32 %v1990_v46  ;;  %2276 = vadd.xlane.f32.xlu1 %v2275_v9  ;;  %v5267_v10 = vpop.f32.mrf.mxu1  ;;  %v2171_v3 = vmul.f32 %v3824_v37, %v5068_v2  ;;  %v2323_v58 = vsel %vm72_vm0, %v2185_v39, 0.0 }
 0x1b7   :  { %v3828_v14 = vpop.eup %3827  ;;  %2315 = vadd.xlane.f32.xlu0 %v2314_v55  ;;  %3853 = vrcp.f32 %v1976_v33  ;;  %v1992_v0 = vadd.f32 1.0, %v3826_v30  ;;  %v3464_v37 = vpop.f32.mrf.mxu0 }
 0x1b8   :  { %v3830_v17 = vpop.eup %3829  ;;  %v5272_v54 = vpop.f32.mrf.mxu1  ;;  %3855 = vpow2.f32 %v3112_v59  ;;  %v2184_v23 = vmul.f32 %v3828_v14, %v5068_v2  ;;  %v2281_v43 = vsel %vm72_vm0, %v2171_v3, 0.0 }
 0x1b9   :  { %v3832_v15 = vpop.eup %3831  ;;  %3857 = vrcp.f32 %v1989_v4  ;;  %v1978_v6 = vadd.f32 1.0, %v3830_v17  ;;  %v1694_v17 = vadd.f32 %v5222_v56, %v5162_v19  ;;  %v1689_v19 = vadd.f32 %v5229_v62, %v5170_v16 }
 0x1ba   :  { %v3834_v42 = vpop.eup %3833  ;;  %2273 = vadd.xlane.f32.xlu1 %v2272_v26  ;;  %v5279_v1 = vpop.f32.mrf.mxu1  ;;  %3859 = vrcp.f32 %v1975_v49  ;;  %v2170_v41 = vmul.f32 %v3832_v15, %v5068_v2  ;;  %v2320_v33 = vsel %vm72_vm0, %v2184_v23, 0.0  ;;  %v1704_v16 = vadd.f32 %v5236_v63, %v5175_v18 }
 0x1bb   :  { %v3836_v11 = vpop.eup %3835  ;;  %2324 = vadd.xlane.f32.xlu0 %v2323_v58  ;;  %3861 = vpow2.f32 %v3111_v25  ;;  %v1991_v40 = vadd.f32 1.0, %v3834_v42  ;;  %v3116_v23 = vmul.f32 -1.442695, %v1694_v17 }
 0x1bc   :  { %v3838_v21 = vpop.eup %3837  ;;  %v5286_v8 = vpop.f32.mrf.mxu1  ;;  %3863 = vrcp.f32 %v1992_v0  ;;  %v2187_v7 = vmul.f32 %v3836_v11, %v5068_v2  ;;  %v2278_v4 = vsel %vm72_vm0, %v2170_v41, 0.0  ;;  %v3118_v18 = vmul.f32 -1.442695, %v1704_v16 }
 0x1bd   :  { %v3840_v46 = vpop.eup %3839  ;;  %v1977_v59 = vadd.f32 1.0, %v3838_v21  ;;  %3865 = vrcp.f32 %v1978_v6 }
 0x1be   :  { %v3842_v36 = vpop.eup %3841  ;;  %2282 = vadd.xlane.f32.xlu1 %v2281_v43  ;;  %v5291_v9 = vpop.f32.mrf.mxu1  ;;  %v2173_v55 = vmul.f32 %v3840_v46, %v5068_v2  ;;  %3867 = vpow2.f32 %v3114_v53  ;;  %v2329_v15 = vsel %vm72_vm0, %v2187_v7, 0.0  ;;  %v3115_v43 = vmul.f32 -1.442695, %v1689_v19 }
 0x1bf   :  { %v3844_v57 = vpop.eup %3843  ;;  %2321 = vadd.xlane.f32.xlu0 %v2320_v33  ;;  %v1994_v14 = vadd.f32 1.0, %v3842_v36  ;;  %3869 = vrcp.f32 %v1991_v40 }
 0x1c0   :  { %v3846_v32 = vpop.eup %3845  ;;  %v3570_v30 = vpop.f32.mrf.mxu1  ;;  %v2186_v25 = vmul.f32 %v3844_v57, %v5068_v2  ;;  %3871 = vrcp.f32 %v1977_v59  ;;  %v2287_v56 = vsel %vm72_vm0, %v2173_v55, 0.0  ;;  %v1699_v57 = vadd.f32 %v5243_v29, %v5182_v34 }
 0x1c1   :  { %v3848_v39 = vpop.eup %3847  ;;  %v1754_v49 = vadd.f32 %v3570_v30, %v3464_v37  ;;  %v1979_v42 = vadd.f32 1.0, %v3846_v32  ;;  %3873 = vpow2.f32 %v3113_v45 }
 0x1c2   :  { %v3850_v3 = vpop.eup %3849  ;;  %2279 = vadd.xlane.f32.xlu1 %v2278_v4  ;;  %v2172_v0 = vmul.f32 %v3848_v39, %v5068_v2  ;;  %3875 = vrcp.f32 %v1994_v14  ;;  %v2326_v6 = vsel %vm72_vm0, %v2186_v25, 0.0  ;;  %v3117_v17 = vmul.f32 -1.442695, %v1699_v57 }
 0x1c3   :  { %v3852_v20 = vpop.eup %3851  ;;  %v3128_v26 = vmul.f32 -1.442695, %v1754_v49  ;;  %2330 = vadd.xlane.f32.xlu0 %v2329_v15  ;;  %v1993_v21 = vadd.f32 1.0, %v3850_v3  ;;  %v1714_v3 = vadd.f32 %v5248_v5, %v5193_v31  ;;  %v1709_v31 = vadd.f32 %v5255_v13, %v5204_v35 }
 0x1c4   :  { %v3854_v58 = vpop.eup %3853  ;;  %v2189_v28 = vmul.f32 %v3852_v20, %v5068_v2  ;;  %v2284_v46 = vsel %vm72_vm0, %v2172_v0, 0.0  ;;  %v1724_v13 = vadd.f32 %v5260_v60, %v5217_v61 }
 0x1c5   :  { %v3856_v11 = vpop.eup %3855  ;;  %3877 = vpow2.f32 %v3128_v26  ;;  %v2175_v62 = vmul.f32 %v3854_v58, %v5068_v2  ;;  %v3120_v19 = vmul.f32 -1.442695, %v1714_v3  ;;  %v3119_v35 = vmul.f32 -1.442695, %v1709_v31  ;;  %v1748_v31 = vpop.f32.mrf.mxu1 }
 0x1c6   :  { %2288 = vadd.xlane.f32.xlu1 %v2287_v56  ;;  %v3858_v41 = vpop.eup %3857  ;;  %3879 = vrcp.f32 %v1979_v42  ;;  %v1996_v40 = vadd.f32 1.0, %v3856_v11  ;;  %v2335_v33 = vsel %vm72_vm0, %v2189_v28, 0.0 }
 0x1c7   :  { %2327 = vadd.xlane.f32.xlu0 %v2326_v6  ;;  %v3860_v53 = vpop.eup %3859  ;;  %3881 = vpow2.f32 %v3116_v23  ;;  %v2188_v37 = vmul.f32 %v3858_v41, %v5068_v2  ;;  %v2293_v63 = vsel %vm72_vm0, %v2175_v62, 0.0  ;;  %v5332_v6 = vld [vmem:[%s5958_s4] ss:$0 sm:$0xff] }
 0x1c8   :  { %v3862_v36 = vpop.eup %3861  ;;  %3883 = vrcp.f32 %v1993_v21  ;;  %v2174_v59 = vmul.f32 %v3860_v53, %v5068_v2 }
 0x1c9   :  { %v3864_v7 = vpop.eup %3863  ;;  %3885 = vpow2.f32 %v3115_v43  ;;  %v1995_v30 = vadd.f32 1.0, %v3862_v36  ;;  %v2332_v4 = vsel %vm72_vm0, %v2188_v37, 0.0 }
 0x1ca   :  { %2285 = vadd.xlane.f32.xlu1 %v2284_v46  ;;  %v3866_v32 = vpop.eup %3865  ;;  %3887 = vrcp.f32 %v1996_v40  ;;  %v2191_v55 = vmul.f32 %v3864_v7, %v5068_v2  ;;  %v2290_v34 = vsel %vm72_vm0, %v2174_v59, 0.0  ;;  %v1719_v40 = vadd.f32 %v5267_v10, %v5232_v24 }
 0x1cb   :  { %2336 = vadd.xlane.f32.xlu0 %v2335_v33  ;;  %v3868_v45 = vpop.eup %3867  ;;  %3889 = vpow2.f32 %v3118_v18  ;;  %v2177_v15 = vmul.f32 %v3866_v32, %v5068_v2  ;;  %v3122_v33 = vmul.f32 -1.442695, %v1724_v13  ;;  %v1734_v24 = vadd.f32 %v5272_v54, %v5246_v44 }
 0x1cc   :  { %v3870_v39 = vpop.eup %3869  ;;  %v1998_v49 = vadd.f32 1.0, %v3868_v45  ;;  %3891 = vrcp.f32 %v1995_v30  ;;  %v2341_v20 = vsel %vm72_vm0, %v2191_v55, 0.0  ;;  %v3121_v32 = vmul.f32 -1.442695, %v1719_v40 }
 0x1cd   :  { %v3872_v14 = vpop.eup %3871  ;;  %v2190_v26 = vmul.f32 %v3870_v39, %v5068_v2  ;;  %3893 = vpow2.f32 %v3117_v17  ;;  %v2299_v5 = vsel %vm72_vm0, %v2177_v15, 0.0  ;;  %v3124_v39 = vmul.f32 -1.442695, %v1734_v24 }
 0x1ce   :  { %2294 = vadd.xlane.f32.xlu1 %v2293_v63  ;;  %v3874_v29 = vpop.eup %3873  ;;  %v2176_v58 = vmul.f32 %v3872_v14, %v5068_v2  ;;  %3895 = vrcp.f32 %v1998_v49  ;;  %v1729_v14 = vadd.f32 %v5279_v1, %v5258_v27  ;;  %v1744_v15 = vadd.f32 %v5286_v8, %v5270_v38 }
 0x1cf   :  { %2333 = vadd.xlane.f32.xlu0 %v2332_v4  ;;  %v3876_v25 = vpop.eup %3875  ;;  %v1997_v11 = vadd.f32 1.0, %v3874_v29  ;;  %v2338_v21 = vsel %vm72_vm0, %v2190_v26, 0.0 }
 0x1d0   :  { %v2193_v2 = vmul.f32 %v5332_v6, %v3876_v25  ;;  %v2296_v41 = vsel %vm72_vm0, %v2176_v58, 0.0  ;;  %v3123_v3 = vmul.f32 -1.442695, %v1729_v14 }
 0x1d2   :  { %2291 = vadd.xlane.f32.xlu1 %v2290_v34  ;;  %v3878_v42 = vpop.eup %3877  ;;  %v2347_v16 = vsel %vm72_vm0, %v2193_v2, 0.0 }
 0x1d3   :  { %2342 = vadd.xlane.f32.xlu0 %v2341_v20  ;;  %v2012_v0 = vadd.f32 1.0, %v3878_v42  ;;  %v3880_v23 = vpop.eup %3879  ;;  %v3126_v42 = vmul.f32 -1.442695, %v1744_v15 }
 0x1d4   :  { %v3882_v56 = vpop.eup %3881  ;;  %v2178_v46 = vmul.f32 %v5332_v6, %v3880_v23 }
 0x1d5   :  { %3897 = vrcp.f32 %v2012_v0  ;;  %v3884_v28 = vpop.eup %3883  ;;  %v2000_v43 = vadd.f32 1.0, %v3882_v56  ;;  %v1739_v0 = vadd.f32 %v5291_v9, %v5281_v12 }
 0x1d6   :  { %2300 = vadd.xlane.f32.xlu1 %v2299_v5  ;;  %3899 = vpow2.f32 %v3120_v19  ;;  %v3886_v53 = vpop.eup %3885  ;;  %v2192_v62 = vmul.f32 %v5332_v6, %v3884_v28  ;;  %v2302_v37 = vsel %vm72_vm0, %v2178_v46, 0.0  ;;  %v1170_v19 = vpop.f32.mrf.mxu0 }
 0x1d7   :  { %2339 = vadd.xlane.f32.xlu0 %v2338_v21  ;;  %3901 = vrcp.f32 %v1997_v11  ;;  %v3888_v36 = vpop.eup %3887  ;;  %v1999_v60 = vadd.f32 1.0, %v3886_v53  ;;  %v3125_v11 = vmul.f32 -1.442695, %v1739_v0  ;;  %v1749_v21 = vadd.f32 %v1748_v31, %v1170_v19 }
 0x1d8   :  { %3903 = vpow2.f32 %v3119_v35  ;;  %v3890_v61 = vpop.eup %3889  ;;  %v2344_v7 = vsel %vm72_vm0, %v2192_v62, 0.0  ;;  %v2195_v57 = vmul.f32 %v5332_v6, %v3888_v36 }
 0x1d9   :  { %3905 = vrcp.f32 %v2000_v43  ;;  %v3892_v59 = vpop.eup %3891  ;;  %v2002_v63 = vadd.f32 1.0, %v3890_v61  ;;  %v3127_v35 = vmul.f32 -1.442695, %v1749_v21 }
 0x1da   :  { %2297 = vadd.xlane.f32.xlu1 %v2296_v41  ;;  %v3894_v18 = vpop.eup %3893  ;;  %3907 = vpow2.f32 %v3122_v33  ;;  %v2353_v45 = vsel %vm72_vm0, %v2195_v57, 0.0  ;;  %v2194_v30 = vmul.f32 %v5332_v6, %v3892_v59 }
 0x1db   :  { %2348 = vadd.xlane.f32.xlu0 %v2347_v16  ;;  %v3896_v10 = vpop.eup %3895  ;;  %3909 = vrcp.f32 %v1999_v60  ;;  %v2001_v34 = vadd.f32 1.0, %v3894_v18 }
 0x1dc   :  { %3911 = vpow2.f32 %v3121_v32  ;;  %v2350_v44 = vsel %vm72_vm0, %v2194_v30, 0.0  ;;  %v2197_v29 = vmul.f32 %v5332_v6, %v3896_v10 }
 0x1dd   :  { %3913 = vrcp.f32 %v2002_v63 }
 0x1de   :  { %2303 = vadd.xlane.f32.xlu1 %v2302_v37  ;;  %3915 = vpow2.f32 %v3124_v39  ;;  %v2359_v27 = vsel %vm72_vm0, %v2197_v29, 0.0 }
 0x1df   :  { %2345 = vadd.xlane.f32.xlu0 %v2344_v7  ;;  %3917 = vrcp.f32 %v2001_v34 }
 0x1e0   :  { %3919 = vpow2.f32 %v3123_v3 }
 0x1e2   :  { %v3898_v4 = vpop.eup %3897 }
 0x1e3   :  { %2354 = vadd.xlane.f32.xlu0 %v2353_v45  ;;  %v2211_v55 = vmul.f32 %v5332_v6, %v3898_v4  ;;  %v3900_v17 = vpop.eup %3899 }
 0x1e4   :  { %v3902_v49 = vpop.eup %3901  ;;  %v2004_v20 = vadd.f32 1.0, %v3900_v17 }
 0x1e5   :  { %v2401_v54 = vsel %vm72_vm0, %v2211_v55, 0.0  ;;  %v3904_v25 = vpop.eup %3903  ;;  %v2196_v1 = vmul.f32 %v5332_v6, %v3902_v49 }
 0x1e6   :  { %2402 = vadd.xlane.f32.xlu1 %v2401_v54  ;;  %v3906_v26 = vpop.eup %3905  ;;  %3921 = vrcp.f32 %v2004_v20  ;;  %v2003_v23 = vadd.f32 1.0, %v3904_v25 }
 0x1e7   :  { %2351 = vadd.xlane.f32.xlu0 %v2350_v44  ;;  %v3908_v58 = vpop.eup %3907  ;;  %v2356_v38 = vsel %vm72_vm0, %v2196_v1, 0.0  ;;  %v2199_v8 = vmul.f32 %v5332_v6, %v3906_v26  ;;  %3923 = vpow2.f32 %v3126_v42 }
 0x1e8   :  { %v3910_v5 = vpop.eup %3909  ;;  %3925 = vrcp.f32 %v2003_v23  ;;  %v2006_v28 = vadd.f32 1.0, %v3908_v58 }
 0x1e9   :  { %v3912_v56 = vpop.eup %3911  ;;  %v2365_v12 = vsel %vm72_vm0, %v2199_v8, 0.0  ;;  %v2198_v9 = vmul.f32 %v5332_v6, %v3910_v5  ;;  %3927 = vpow2.f32 %v3125_v11  ;;  %v6081_v5 = vpack.i.bf16 %v4848_v22, %v4620_v47 }
 0x1ea   :  { %v3914_v2 = vpop.eup %3913  ;;  %3929 = vrcp.f32 %v2006_v28  ;;  %v2005_v46 = vadd.f32 1.0, %v3912_v56  ;;  %v6082_v28 = vpack.i.bf16 %v4845_v52, %v4629_v50  ;;  %v6083_v47 = vpack.i.bf16 %v4866_v48, %v4632_v51  ;;  %v6091_v51 = vld [vmem:[#allocation21_spill] sm:$0xff] }
 0x1eb   :  { %2360 = vadd.xlane.f32.xlu0 %v2359_v27  ;;  %v3916_v13 = vpop.eup %3915  ;;  %v2362_v53 = vsel %vm72_vm0, %v2198_v9, 0.0  ;;  %v2201_v43 = vmul.f32 %v5332_v6, %v3914_v2  ;;  %3931 = vpow2.f32 %v3127_v35 }
 0x1ec   :  { %v3918_v16 = vpop.eup %3917  ;;  %3933 = vrcp.f32 %v2005_v46  ;;  %v2008_v40 = vadd.f32 1.0, %v3916_v13  ;;  %v6084_v46 = vld [vmem:[#allocation48_spill] sm:$0xff] }
 0x1ed   :  { %v3920_v36 = vpop.eup %3919  ;;  %v2371_v33 = vsel %vm72_vm0, %v2201_v43, 0.0  ;;  %v2200_v37 = vmul.f32 %v5332_v6, %v3918_v16  ;;  %v6087_v43 = vld [vmem:[#allocation50_spill] sm:$0xff] }
 0x1ee   :  { %3935 = vrcp.f32 %v2008_v40  ;;  %v2007_v57 = vadd.f32 1.0, %v3920_v36 }
 0x1ef   :  { %2357 = vadd.xlane.f32.xlu0 %v2356_v38  ;;  %v2368_v59 = vsel %vm72_vm0, %v2200_v37, 0.0  ;;  %v5438_v37 = vstv %s5959_s5 }
 0x1f0   :  { %3937 = vrcp.f32 %v2007_v57 }
 0x1f3   :  { %2366 = vadd.xlane.f32.xlu0 %v2365_v12  ;;  %v5366_v41 = vpop.xlane.xlu1 %2216  ;;  %v3922_v61 = vpop.eup %3921 }
 0x1f4   :  { %v3924_v7 = vpop.eup %3923  ;;  %v2203_v32 = vmul.f32 %v5332_v6, %v3922_v61 }
 0x1f5   :  { %v3926_v18 = vpop.eup %3925  ;;  %v2010_v10 = vadd.f32 1.0, %v3924_v7 }
 0x1f6   :  { %v3928_v24 = vpop.eup %3927  ;;  %v2377_v45 = vsel %vm72_vm0, %v2203_v32, 0.0  ;;  %v2202_v30 = vmul.f32 %v5332_v6, %v3926_v18  ;;  %v6093_v32 = vld [vmem:[#allocation52_spill] sm:$0xff]  ;;  %v6094_v18 = vld [vmem:[#allocation22_spill] sm:$0xff] }
 0x1f7   :  { %2363 = vadd.xlane.f32.xlu0 %v2362_v53  ;;  %v5370_v62 = vpop.xlane.xlu1 %2213  ;;  %v3930_v4 = vpop.eup %3929  ;;  %3939 = vrcp.f32 %v2010_v10  ;;  %v2009_v14 = vadd.f32 1.0, %v3928_v24  ;;  %v6085_v53 = vld [vmem:[#allocation19_spill] sm:$0xff]  ;;  %v6095_v24 = vpack.i.bf16 %v6093_v32, %v6094_v18  ;;  %v3946_v10 = vld [vmem:[%s5957_s1 + $0xf8] sm:$0xff]  ;;  %v6120_v32 = vld [vmem:[#allocation60_spill] sm:$0xff] }
 0x1f8   :  { %v3932_v39 = vpop.eup %3931  ;;  %v2374_v17 = vsel %vm72_vm0, %v2202_v30, 0.0  ;;  %v2205_v34 = vmul.f32 %v5332_v6, %v3930_v4  ;;  %v6086_v50 = vpack.i.bf16 %v6084_v46, %v6085_v53  ;;  %v3947_v4 = vld [vmem:[%s5957_s1 + $0x78] sm:$0xff]  ;;  %v6112_v53 = vld [vmem:[#allocation28_spill] sm:$0xff] }
 0x1f9   :  { %v3934_v44 = vpop.eup %3933  ;;  %3941 = vrcp.f32 %v2009_v14  ;;  %v2011_v29 = vadd.f32 1.0, %v3932_v39  ;;  %v6111_v46 = vld [vmem:[#allocation58_spill] sm:$0xff] }
 0x1fa   :  { %v2383_v49 = vsel %vm72_vm0, %v2205_v34, 0.0  ;;  %v2204_v3 = vmul.f32 %v5332_v6, %v3934_v44  ;;  %v6097_v34 = vld [vmem:[#allocation23_spill] sm:$0xff]  ;;  %v6121_v18 = vld [vmem:[#allocation30_spill] sm:$0xff] }
 0x1fb   :  { %2372 = vadd.xlane.f32.xlu0 %v2371_v33  ;;  %v5374_v60 = vpop.xlane.xlu1 %2222  ;;  %v3936_v15 = vpop.eup %3935  ;;  %3943 = vrcp.f32 %v2011_v29  ;;  %v6090_v33 = vld [vmem:[#allocation49_spill] sm:$0xff] }
 0x1fc   :  { %v2380_v20 = vsel %vm72_vm0, %v2204_v3, 0.0  ;;  %v2207_v27 = vmul.f32 %v5332_v6, %v3936_v15  ;;  %v6092_v48 = vpack.i.bf16 %v6090_v33, %v6091_v51  ;;  %v6099_v3 = vld [vmem:[#allocation54_spill] sm:$0xff]  ;;  %v6100_v15 = vld [vmem:[#allocation24_spill] sm:$0xff] }
 0x1fd   :  { %v3938_v1 = vpop.eup %3937 }
 0x1fe   :  { %v2389_v42 = vsel %vm72_vm0, %v2207_v27, 0.0  ;;  %v2206_v0 = vmul.f32 %v5332_v6, %v3938_v1 }
 0x1ff   :  { %2369 = vadd.xlane.f32.xlu0 %v2368_v59  ;;  %v5378_v63 = vpop.xlane.xlu1 %2219 }
 0x200   :  { %v2386_v19 = vsel %vm72_vm0, %v2206_v0, 0.0  ;;  %v6103_v0 = vld [vmem:[#allocation25_spill] sm:$0xff] }
 0x203   :  { %2378 = vadd.xlane.f32.xlu0 %v2377_v45  ;;  %v5382_v55 = vpop.xlane.xlu1 %2228 }
 0x204   :  { %v3940_v58 = vpop.eup %3939 }
 0x205   :  { %v2209_v31 = vmul.f32 %v5332_v6, %v3940_v58 }
 0x206   :  { %v3942_v38 = vpop.eup %3941 }
 0x207   :  { %2375 = vadd.xlane.f32.xlu0 %v2374_v17  ;;  %v5386_v54 = vpop.xlane.xlu1 %2225  ;;  %v2395_v56 = vsel %vm72_vm0, %v2209_v31, 0.0  ;;  %v2208_v11 = vmul.f32 %v5332_v6, %v3942_v38  ;;  %v6096_v17 = vld [vmem:[#allocation51_spill] sm:$0xff]  ;;  %v6105_v38 = vld [vmem:[#allocation56_spill] sm:$0xff] }
 0x208   :  { %v3944_v21 = vpop.eup %3943  ;;  %v6098_v44 = vpack.i.bf16 %v6096_v17, %v6097_v34  ;;  %v6126_v34 = vld [vmem:[#allocation59_spill] sm:$0xff] }
 0x209   :  { %v2392_v12 = vsel %vm72_vm0, %v2208_v11, 0.0  ;;  %v2210_v9 = vmul.f32 %v5332_v6, %v3944_v21  ;;  %v6088_v6 = vld [vmem:[#allocation20_spill] sm:$0xff] }
 0x20a   :  { %v6089_v16 = vpack.i.bf16 %v6087_v43, %v6088_v6 }
 0x20b   :  { %2384 = vadd.xlane.f32.xlu0 %v2383_v49  ;;  %v5390_v25 = vpop.xlane.xlu1 %2234  ;;  %v2398_v22 = vsel %vm72_vm0, %v2210_v9, 0.0 }
 0x20f   :  { %2381 = vadd.xlane.f32.xlu0 %v2380_v20  ;;  %v5394_v26 = vpop.xlane.xlu1 %2231  ;;  %v2259_v40 = vpop.xlane.xlu0 %2258  ;;  %v6101_v20 = vpack.i.bf16 %v6099_v3, %v6100_v15 }
 0x210   :  { %v2421_v7 = vadd.f32 %v5438_v37, %v2259_v40  ;;  %v6115_v40 = vld [vmem:[#allocation29_spill] sm:$0xff] }
 0x212   :  { %v2485_v39 = vmul.f32 %v3947_v4, %v2421_v7  ;;  %v6118_v7 = vld [vmem:[#allocation3_spill] sm:$0xff]  ;;  %v6124_v4 = vld [vmem:[#allocation5_spill] sm:$0xff] }
 0x213   :  { %2390 = vadd.xlane.f32.xlu0 %v2389_v42  ;;  %v5398_v23 = vpop.xlane.xlu1 %2240  ;;  %v6102_v42 = vld [vmem:[#allocation53_spill] sm:$0xff] }
 0x214   :  { %v6104_v58 = vpack.i.bf16 %v6102_v42, %v6103_v0  ;;  %v6130_v42 = vld [vmem:[#allocation4_spill] sm:$0xff] }
 0x217   :  { %2387 = vadd.xlane.f32.xlu0 %v2386_v19  ;;  %v5402_v8 = vpop.xlane.xlu1 %2237 }
 0x219   :  { %3576 = vxpose.xlu1.b32.start [1/16] (narrow) %v6081_v5, 40  ;;  %v6106_v5 = vld [vmem:[#allocation26_spill] sm:$0xff] }
 0x21b   :  { %2396 = vadd.xlane.f32.xlu0 %v2395_v56  ;;  %v5409_v2 = vpop.xlane.xlu1 %2246  ;;  %v6107_v56 = vpack.i.bf16 %v6105_v38, %v6106_v5  ;;  %v6132_v5 = vld [vmem:[#allocation34_spill] sm:$0xff] }
 0x21d   :  { %3578 = vxpose.xlu1.b32.cont [2/16] (narrow) %v6082_v28, 40  ;;  %v6108_v28 = vld [vmem:[#allocation55_spill] sm:$0xff] }
 0x21f   :  { %2393 = vadd.xlane.f32.xlu0 %v2392_v12  ;;  %v5416_v35 = vpop.xlane.xlu1 %2243  ;;  %v6109_v12 = vld [vmem:[#allocation27_spill] sm:$0xff] }
 0x220   :  { %v6110_v9 = vpack.i.bf16 %v6108_v28, %v6109_v12 }
 0x221   :  { %3580 = vxpose.xlu1.b32.cont [3/16] (narrow) %v6083_v47, 40 }
 0x223   :  { %2399 = vadd.xlane.f32.xlu0 %v2398_v22  ;;  %v5422_v13 = vpop.xlane.xlu1 %2252 }
 0x225   :  { %3582 = vxpose.xlu1.b32.cont [4/16] (narrow) %v6086_v50, 40  ;;  %v6113_v50 = vpack.i.bf16 %v6111_v46, %v6112_v53  ;;  %v6135_v46 = vld [vmem:[#allocation37_spill] sm:$0xff]  ;;  %v6136_v53 = vld [vmem:[#allocation7_spill] sm:$0xff] }
 0x227   :  { %v5427_v52 = vpop.xlane.xlu1 %2249 }
 0x229   :  { %3584 = vxpose.xlu1.b32.cont [5/16] (narrow) %v6089_v16, 40  ;;  %v6114_v16 = vld [vmem:[#allocation57_spill] sm:$0xff] }
 0x22a   :  { %v6116_v33 = vpack.i.bf16 %v6114_v16, %v6115_v40 }
 0x22b   :  { %v2256_v36 = vpop.xlane.xlu1 %2255 }
 0x22d   :  { %3586 = vxpose.xlu1.b32.cont [6/16] (narrow) %v6092_v48, 40  ;;  %v6117_v48 = vld [vmem:[#allocation33_spill] sm:$0xff] }
 0x22f   :  { %v5440_v61 = vpop.xlane.xlu1 %2264 }
 0x230   :  { %v2307_v57 = vpop.xlane.xlu0 %2306 }
 0x231   :  { %v2437_v59 = vadd.f32 %v5438_v37, %v2307_v57  ;;  %3588 = vxpose.xlu1.b32.cont [7/16] (narrow) %v6095_v24, 40  ;;  %v6119_v57 = vpack.i.bf16 %v6117_v48, %v6118_v7  ;;  %v6122_v24 = vpack.i.bf16 %v6120_v32, %v6121_v18  ;;  %v6139_v48 = vld [vmem:[#allocation8_spill] sm:$0xff]  ;;  %v2420_v32 = vadd.f32 %v5438_v37, %v2256_v36  ;;  %v3948_v36 = vld [vmem:[%s5957_s1 + $0xf0] sm:$0xff] }
 0x233   :  { %v2501_v45 = vmul.f32 %v3946_v10, %v2437_v59  ;;  %v5450_v30 = vpop.xlane.xlu1 %2261 }
 0x234   :  { %v5455_v14 = vpop.xlane.xlu0 %2312 }
 0x235   :  { %3267 = vmatprep.subr.mxu0 %v2501_v45  ;;  %3590 = vxpose.xlu1.b32.cont [8/16] (narrow) %v6098_v44, 40  ;;  %v6123_v45 = vld [vmem:[#allocation32_spill] sm:$0xff]  ;;  %v6127_v44 = vld [vmem:[#allocation31_spill] sm:$0xff] }
 0x236   :  { %3268 = vmatpush3.msra.mxu0 %v2485_v39  ;;  %v6125_v39 = vpack.i.bf16 %v6123_v45, %v6124_v4  ;;  %v6128_v3 = vpack.i.bf16 %v6126_v34, %v6127_v44  ;;  %v6141_v4 = vld [vmem:[#allocation39_spill] sm:$0xff] }
 0x237   :  { %v5460_v29 = vpop.xlane.xlu1 %2270 }
 0x238   :  { %v5462_v49 = vpop.xlane.xlu0 %2309 }
 0x239   :  { %3592 = vxpose.xlu1.b32.cont [9/16] (narrow) %v6101_v20, 40  ;;  %v6129_v20 = vld [vmem:[#allocation35_spill] sm:$0xff] }
 0x23a   :  { %v6131_v0 = vpack.i.bf16 %v6129_v20, %v6130_v42 }
 0x23b   :  { %v5467_v27 = vpop.xlane.xlu1 %2267 }
 0x23c   :  { %v5469_v1 = vpop.xlane.xlu0 %2318 }
 0x23d   :  { %3594 = vxpose.xlu1.b32.cont [10/16] (narrow) %v6104_v58, 40 }
 0x23f   :  { %v5474_v19 = vpop.xlane.xlu1 %2276 }
 0x240   :  { %v5476_v31 = vpop.xlane.xlu0 %2315 }
 0x241   :  { %3596 = vxpose.xlu1.b32.cont [11/16] (narrow) %v6107_v56, 40  ;;  %v6133_v56 = vld [vmem:[#allocation6_spill] sm:$0xff] }
 0x242   :  { %v6134_v28 = vpack.i.bf16 %v6132_v5, %v6133_v56  ;;  %v3949_v5 = vld [vmem:[%s5957_s1 + $0x70] sm:$0xff] }
 0x243   :  { %v5481_v11 = vpop.xlane.xlu1 %2273  ;;  %v2484_v56 = vmul.f32 %v3949_v5, %v2420_v32 }
 0x244   :  { %v5483_v21 = vpop.xlane.xlu0 %2324 }
 0x245   :  { %3598 = vxpose.xlu1.b32.cont [12/16] (narrow) %v6110_v9, 40 }
 0x247   :  { %v5488_v47 = vpop.xlane.xlu1 %2282 }
 0x248   :  { %v5490_v22 = vpop.xlane.xlu0 %2321 }
 0x249   :  { %3600 = vxpose.xlu1.b32.cont [13/16] (narrow) %v6113_v50, 40  ;;  %v6137_v50 = vpack.i.bf16 %v6135_v46, %v6136_v53  ;;  %v6144_v46 = vld [vmem:[#allocation38_spill] sm:$0xff] }
 0x24a   :  { %v6145_v53 = vld [vmem:[#allocation10_spill] sm:$0xff] }
 0x24b   :  { %v5495_v43 = vpop.xlane.xlu1 %2279 }
 0x24c   :  { %v5497_v6 = vpop.xlane.xlu0 %2330 }
 0x24d   :  { %3602 = vxpose.xlu1.b32.cont [14/16] (narrow) %v6116_v33, 40  ;;  %v6138_v33 = vld [vmem:[#allocation36_spill] sm:$0xff] }
 0x24e   :  { %v6140_v7 = vpack.i.bf16 %v6138_v33, %v6139_v48  ;;  %v3951_v33 = vld [vmem:[%s5957_s1 + $0x68] sm:$0xff] }
 0x24f   :  { %v2289_v51 = vpop.xlane.xlu1 %2288 }
 0x250   :  { %3633 = vxpose.xlu0.b32.start [1/16] (narrow) %v6119_v57, 40  ;;  %v5505_v59 = vpop.xlane.xlu0 %2327 }
 0x251   :  { %3604 = vxpose.xlu1.b32.cont [15/16] (narrow) %v6122_v24, 40 }
 0x253   :  { %v2286_v10 = vpop.xlane.xlu1 %2285 }
 0x254   :  { %3635 = vxpose.xlu0.b32.cont [2/16] (narrow) %v6125_v39, 40  ;;  %v5513_v17 = vpop.xlane.xlu0 %2336  ;;  %v6142_v39 = vld [vmem:[#allocation9_spill] sm:$0xff] }
 0x255   :  { %3606 = vxpose.xlu1.b32.end [16/16] (narrow) %v6128_v3, 40  ;;  %v6143_v34 = vpack.i.bf16 %v6141_v4, %v6142_v39  ;;  %v2419_v3 = vadd.f32 %v5438_v37, %v5422_v13  ;;  %v3950_v13 = vld [vmem:[%s5957_s1 + $0xe8] sm:$0xff] }
 0x257   :  { %v2295_v15 = vpop.xlane.xlu1 %2294  ;;  %v2483_v48 = vmul.f32 %v3951_v33, %v2419_v3  ;;  %v6147_v3 = vld [vmem:[#allocation41_spill] sm:$0xff] }
 0x258   :  { %3637 = vxpose.xlu0.b32.cont [3/16] (narrow) %v6131_v0, 40  ;;  %v5521_v58 = vpop.xlane.xlu0 %2333  ;;  %v2418_v0 = vadd.f32 %v5438_v37, %v5427_v52  ;;  %v2417_v52 = vadd.f32 %v5438_v37, %v5409_v2  ;;  %v3953_v2 = vld [vmem:[%s5957_s1 + $0x60] sm:$0xff] }
 0x25b   :  { %v2292_v38 = vpop.xlane.xlu1 %2291 }
 0x25c   :  { %3639 = vxpose.xlu0.b32.cont [4/16] (narrow) %v6134_v28, 40  ;;  %v5526_v12 = vpop.xlane.xlu0 %2342  ;;  %v2433_v28 = vadd.f32 %v5438_v37, %v2295_v15  ;;  %v2432_v15 = vadd.f32 %v5438_v37, %v2292_v38  ;;  %v3954_v38 = vld [vmem:[%s5957_s1 + $0xd8] sm:$0xff] }
 0x25e   :  { %v2497_v4 = vmul.f32 %v3954_v38, %v2433_v28  ;;  %v3956_v28 = vld [vmem:[%s5957_s1 + $0xd0] sm:$0xff] }
 0x25f   :  { %v2301_v9 = vpop.xlane.xlu1 %2300 }
 0x260   :  { %3641 = vxpose.xlu0.b32.cont [5/16] (narrow) %v6137_v50, 40  ;;  %v5531_v16 = vpop.xlane.xlu0 %2339  ;;  %v2435_v24 = vadd.f32 %v5438_v37, %v2301_v9  ;;  %v6146_v50 = vpack.i.bf16 %v6144_v46, %v6145_v53  ;;  %v3958_v53 = vld [vmem:[%s5957_s1 + $0x1f8] sm:$0xff] }
 0x262   :  { %v2499_v9 = vmul.f32 %v3950_v13, %v2435_v24  ;;  %v2482_v24 = vmul.f32 %v3953_v2, %v2418_v0  ;;  %v2496_v13 = vmul.f32 %v3956_v28, %v2432_v15  ;;  %v6151_v15 = vld [vmem:[#allocation12_spill] sm:$0xff] }
 0x263   :  { %v2298_v40 = vpop.xlane.xlu1 %2297 }
 0x264   :  { %3643 = vxpose.xlu0.b32.cont [6/16] (narrow) %v6140_v7, 40  ;;  %v5536_v57 = vpop.xlane.xlu0 %2348  ;;  %v2434_v20 = vadd.f32 %v5438_v37, %v2298_v40  ;;  %v3952_v7 = vld [vmem:[%s5957_s1 + $0xe0] sm:$0xff] }
 0x266   :  { %v2498_v32 = vmul.f32 %v3952_v7, %v2434_v20  ;;  %v6148_v20 = vld [vmem:[#allocation11_spill] sm:$0xff] }
 0x267   :  { %v2304_v18 = vpop.xlane.xlu1 %2303 }
 0x268   :  { %v2436_v45 = vadd.f32 %v5438_v37, %v2304_v18  ;;  %3645 = vxpose.xlu0.b32.cont [7/16] (narrow) %v6143_v34, 40  ;;  %v5544_v44 = vpop.xlane.xlu0 %2345  ;;  %v2416_v18 = vadd.f32 %v5438_v37, %v5416_v35 }
 0x26a   :  { %v2500_v42 = vmul.f32 %v3948_v36, %v2436_v45  ;;  %v2431_v45 = vadd.f32 %v5438_v37, %v2289_v51  ;;  %v6149_v36 = vpack.i.bf16 %v6147_v3, %v6148_v20  ;;  %v3955_v51 = vld [vmem:[%s5957_s1 + $0x58] sm:$0xff]  ;;  %v6153_v20 = vld [vmem:[#allocation43_spill] sm:$0xff] }
 0x26b   :  { %v2481_v0 = vmul.f32 %v3955_v51, %v2417_v52 }
 0x26c   :  { %3647 = vxpose.xlu0.b32.cont [8/16] (narrow) %v6146_v50, 40  ;;  %v2355_v40 = vpop.xlane.xlu0 %2354  ;;  %3269 = vmatprep.subr.mxu0 %v2500_v42  ;;  %v2415_v42 = vadd.f32 %v5438_v37, %v5398_v23  ;;  %v3957_v23 = vld [vmem:[%s5957_s1 + $0x50] sm:$0xff] }
 0x26d   :  { %3270 = vmatpush3.msra.mxu0 %v2484_v56  ;;  %v2453_v39 = vadd.f32 %v5438_v37, %v2355_v40  ;;  %v2430_v56 = vadd.f32 %v5438_v37, %v2286_v10  ;;  %v2480_v46 = vmul.f32 %v3957_v23, %v2416_v18  ;;  %v2429_v10 = vadd.f32 %v5438_v37, %v5488_v47  ;;  %v3959_v40 = vld [vmem:[%s5957_s1 + $0xc8] sm:$0xff] }
 0x26e   :  { %3271 = vmatprep.subr.mxu0 %v2499_v9  ;;  %v2414_v9 = vadd.f32 %v5438_v37, %v5402_v8  ;;  %v2495_v52 = vmul.f32 %v3959_v40, %v2431_v45  ;;  %v3960_v8 = vld [vmem:[%s5957_s1 + $0x178] sm:$0xff]  ;;  %v2413_v47 = vadd.f32 %v5438_v37, %v5390_v25  ;;  %v3961_v18 = vld [vmem:[%s5957_s1 + $0x48] sm:$0xff]  ;;  %v3962_v45 = vld [vmem:[%s5957_s1 + $0xc0] sm:$0xff]  ;;  %v2412_v25 = vadd.f32 %v5438_v37, %v5394_v26 }
 0x26f   :  { %3272 = vmatpush3.msra.mxu0 %v2483_v48  ;;  %v2403_v34 = vpop.xlane.xlu1 %2402  ;;  %v2517_v33 = vmul.f32 %v3960_v8, %v2453_v39  ;;  %v6150_v48 = vld [vmem:[#allocation40_spill] sm:$0xff]  ;;  %v2479_v2 = vmul.f32 %v3961_v18, %v2415_v42  ;;  %v2494_v38 = vmul.f32 %v3962_v45, %v2430_v56  ;;  %v2411_v26 = vadd.f32 %v5438_v37, %v5382_v55  ;;  %v3966_v56 = vld [vmem:[%s5957_s1 + $0xb0] sm:$0xff] }
 0x270   :  { %3649 = vxpose.xlu0.b32.cont [9/16] (narrow) %v6149_v36, 40  ;;  %v5586_v35 = vpop.xlane.xlu0 %2351  ;;  %3273 = vmatprep.subr.mxu0 %v2498_v32  ;;  %v2469_v5 = vadd.f32 %v5438_v37, %v2403_v34  ;;  %v6152_v7 = vpack.i.bf16 %v6150_v48, %v6151_v15  ;;  %v2427_v34 = vadd.f32 %v5438_v37, %v5474_v19  ;;  %v6154_v36 = vld [vmem:[#allocation13_spill] sm:$0xff] }
 0x271   :  { %3274 = vmatpush3.msra.mxu0 %v2482_v24  ;;  %v2428_v24 = vadd.f32 %v5438_v37, %v5495_v43  ;;  %v3964_v43 = vld [vmem:[%s5957_s1 + $0xb8] sm:$0xff]  ;;  %v6155_v42 = vpack.i.bf16 %v6153_v20, %v6154_v36  ;;  %v3967_v55 = vld [vmem:[%s5957_s1 + $0x30] sm:$0xff]  ;;  %v2425_v23 = vadd.f32 %v5438_v37, %v5460_v29  ;;  %v2424_v8 = vadd.f32 %v5438_v37, %v5467_v27  ;;  %v3976_v20 = vld [vmem:[%s5957_s1 + $0x88] sm:$0xff] }
 0x272   :  { %3275 = vmatprep.subr.mxu0 %v2497_v4  ;;  %v2533_v50 = vmul.f32 %v3958_v53, %v2469_v5  ;;  %v3963_v4 = vld [vmem:[%s5957_s1 + $0x40] sm:$0xff]  ;;  %v2493_v3 = vmul.f32 %v3964_v43, %v2429_v10  ;;  %v2426_v5 = vadd.f32 %v5438_v37, %v5481_v11  ;;  %v3968_v11 = vld [vmem:[%s5957_s1 + $0xa8] sm:$0xff]  ;;  %v6156_v53 = vld [vmem:[#allocation42_spill] sm:$0xff]  ;;  %v2408_v15 = vadd.f32 %v5438_v37, %v5378_v63 }
 0x273   :  { %3276 = vmatpush3.msra.mxu0 %v2481_v0  ;;  %v2478_v39 = vmul.f32 %v3963_v4, %v2414_v9  ;;  %v3965_v0 = vld [vmem:[%s5957_s1 + $0x38] sm:$0xff]  ;;  %v2492_v28 = vmul.f32 %v3966_v56, %v2428_v24  ;;  %v2476_v9 = vmul.f32 %v3967_v55, %v2412_v25  ;;  %v6160_v24 = vld [vmem:[#allocation15_spill] sm:$0xff]  ;;  %v2407_v63 = vadd.f32 %v5438_v37, %v5366_v41  ;;  %v3975_v41 = vld [vmem:[%s5957_s1 + $0x10] sm:$0xff] }
 0x274   :  { %3651 = vxpose.xlu0.b32.cont [10/16] (narrow) %v6152_v7, 40  ;;  %v5617_v32 = vpop.xlane.xlu0 %2360  ;;  %3277 = vmatprep.subr.mxu0 %v2496_v13  ;;  %v2477_v19 = vmul.f32 %v3965_v0, %v2413_v47  ;;  %v2410_v13 = vadd.f32 %v5438_v37, %v5386_v54  ;;  %v2409_v54 = vadd.f32 %v5438_v37, %v5374_v60  ;;  %v3971_v60 = vld [vmem:[%s5957_s1 + $0x20] sm:$0xff]  ;;  %v3972_v27 = vld [vmem:[%s5957_s1 + $0x98] sm:$0xff]  ;;  %v6162_v36 = vld [vmem:[#allocation44_spill] sm:$0xff] }
 0x275   :  { %3314 = vmatprep.subr.mxu1 %v2533_v50  ;;  %3278 = vmatpush3.msra.mxu0 %v2480_v46  ;;  %v2491_v46 = vmul.f32 %v3968_v11, %v2427_v34  ;;  %v6157_v50 = vld [vmem:[#allocation14_spill] sm:$0xff]  ;;  %v2423_v47 = vadd.f32 %v5438_v37, %v5440_v61  ;;  %v2489_v18 = vmul.f32 %v3972_v27, %v2425_v23  ;;  %v6165_v55 = vld [vmem:[#allocation47_spill] sm:$0xff] }
 0x276   :  { %3315 = vmatpush3.msra.mxu1 %v2517_v33  ;;  %3279 = vmatprep.subr.mxu0 %v2495_v52  ;;  %v6158_v10 = vpack.i.bf16 %v6156_v53, %v6157_v50  ;;  %v3969_v52 = vld [vmem:[%s5957_s1 + $0x28] sm:$0xff]  ;;  %v3970_v33 = vld [vmem:[%s5957_s1 + $0xa0] sm:$0xff]  ;;  %v2474_v7 = vmul.f32 %v3971_v60, %v2410_v13  ;;  %v3973_v25 = vld [vmem:[%s5957_s1 + $0x18] sm:$0xff]  ;;  %v2422_v4 = vadd.f32 %v5438_v37, %v5450_v30 }
 0x277   :  { %3280 = vmatpush3.msra.mxu0 %v2479_v2  ;;  %v2475_v29 = vmul.f32 %v3969_v52, %v2411_v26  ;;  %v2490_v48 = vmul.f32 %v3970_v33, %v2426_v5  ;;  %v6159_v2 = vld [vmem:[#allocation45_spill] sm:$0xff]  ;;  %v2473_v61 = vmul.f32 %v3973_v25, %v2409_v54  ;;  %v2406_v43 = vadd.f32 %v5438_v37, %v5370_v62  ;;  %v3977_v62 = vld [vmem:[%s5957_s1 + $0x8] sm:$0xff]  ;;  %v3978_v5 = vld [vmem:[%s5957_s1 + $0x80] sm:$0xff] }
 0x278   :  { %3653 = vxpose.xlu0.b32.cont [11/16] (narrow) %v6155_v42, 40  ;;  %v5642_v51 = vpop.xlane.xlu0 %2357  ;;  %3281 = vmatprep.subr.mxu0 %v2494_v38  ;;  %v6161_v45 = vpack.i.bf16 %v6159_v2, %v6160_v24  ;;  %v2487_v30 = vmul.f32 %v3976_v20, %v2423_v47  ;;  %v6163_v42 = vld [vmem:[#allocation16_spill] sm:$0xff]  ;;  %v2486_v56 = vmul.f32 %v3978_v5, %v2422_v4  ;;  %v6169_v53 = vld [vmem:[#allocation18_spill] sm:$0xff] }
 0x279   :  { %3282 = vmatpush3.msra.mxu0 %v2478_v39  ;;  %v3974_v39 = vld [vmem:[%s5957_s1 + $0x90] sm:$0xff]  ;;  %v6164_v26 = vpack.i.bf16 %v6162_v36, %v6163_v42  ;;  %v2451_v4 = vadd.f32 %v5438_v37, %v5536_v57  ;;  %v3982_v57 = vld [vmem:[%s5957_s1 + $0x1e8] sm:$0xff]  ;;  %v2449_v36 = vadd.f32 %v5438_v37, %v5526_v12  ;;  %v2448_v5 = vadd.f32 %v5438_v37, %v5531_v16  ;;  %v3985_v12 = vld [vmem:[%s5957_s1 + $0x160] sm:$0xff] }
 0x27a   :  { %3283 = vmatprep.subr.mxu0 %v2493_v3  ;;  %v2488_v34 = vmul.f32 %v3974_v39, %v2424_v8  ;;  %v2472_v3 = vmul.f32 %v3975_v41, %v2408_v15  ;;  %v2450_v41 = vadd.f32 %v5438_v37, %v5544_v44  ;;  %v3983_v44 = vld [vmem:[%s5957_s1 + $0x168] sm:$0xff]  ;;  %v3987_v16 = vld [vmem:[%s5957_s1 + $0x158] sm:$0xff] }
 0x27b   :  { %3284 = vmatpush3.msra.mxu0 %v2477_v19  ;;  %v2471_v19 = vmul.f32 %v3977_v62, %v2407_v63  ;;  %v2515_v42 = vmul.f32 %v3983_v44, %v2451_v4  ;;  %v3984_v62 = vld [vmem:[%s5957_s1 + $0x1e0] sm:$0xff]  ;;  %v2443_v4 = vadd.f32 %v5438_v37, %v5483_v21  ;;  %v3997_v21 = vld [vmem:[%s5957_s1 + $0x130] sm:$0xff] }
 0x27c   :  { %3655 = vxpose.xlu0.b32.cont [12/16] (narrow) %v6158_v10, 40  ;;  %v5667_v40 = vpop.xlane.xlu0 %2366  ;;  %3285 = vmatprep.subr.mxu0 %v2492_v28  ;;  %v3979_v28 = vld [vmem:[%s5957_s1] sm:$0xff] }
 0x27d   :  { %3286 = vmatpush3.msra.mxu0 %v2476_v9  ;;  %v2470_v13 = vmul.f32 %v3979_v28, %v2406_v43  ;;  %v6166_v9 = vld [vmem:[#allocation17_spill] sm:$0xff] }
 0x27e   :  { %3287 = vmatprep.subr.mxu0 %v2491_v46  ;;  %v6167_v23 = vpack.i.bf16 %v6165_v55, %v6166_v9  ;;  %v6168_v46 = vld [vmem:[#allocation46_spill] sm:$0xff]  ;;  %v2447_v9 = vadd.f32 %v5438_v37, %v5513_v17  ;;  %v3989_v17 = vld [vmem:[%s5957_s1 + $0x150] sm:$0xff] }
 0x27f   :  { %3288 = vmatpush3.msra.mxu0 %v2475_v29  ;;  %v6170_v50 = vpack.i.bf16 %v6168_v46, %v6169_v53  ;;  %v3988_v53 = vld [vmem:[%s5957_s1 + $0x1d0] sm:$0xff] }
 0x280   :  { %3657 = vxpose.xlu0.b32.cont [13/16] (narrow) %v6161_v45, 40  ;;  %v5692_v38 = vpop.xlane.xlu0 %2363  ;;  %3289 = vmatprep.subr.mxu0 %v2490_v48  ;;  %v2452_v45 = vadd.f32 %v5438_v37, %v5586_v35  ;;  %v3981_v35 = vld [vmem:[%s5957_s1 + $0x170] sm:$0xff] }
 0x281   :  { %3290 = vmatpush3.msra.mxu0 %v2474_v7 }
 0x282   :  { %3291 = vmatprep.subr.mxu0 %v2489_v18 }
 0x283   :  { %3292 = vmatpush3.msra.mxu0 %v2473_v61 }
 0x284   :  { %3659 = vxpose.xlu0.b32.cont [14/16] (narrow) %v6164_v26, 40  ;;  %v5715_v0 = vpop.xlane.xlu0 %2372  ;;  %3293 = vmatprep.subr.mxu0 %v2488_v34  ;;  %v3980_v34 = vld [vmem:[%s5957_s1 + $0x1f0] sm:$0xff] }
 0x285   :  { %3294 = vmatpush3.msra.mxu0 %v2472_v3  ;;  %v2516_v3 = vmul.f32 %v3981_v35, %v2452_v45  ;;  %v2444_v45 = vadd.f32 %v5438_v37, %v5505_v59  ;;  %v3995_v59 = vld [vmem:[%s5957_s1 + $0x138] sm:$0xff] }
 0x286   :  { %3295 = vmatprep.subr.mxu0 %v2487_v30 }
 0x287   :  { %3296 = vmatpush3.msra.mxu0 %v2471_v19  ;;  %v2508_v35 = vmul.f32 %v3997_v21, %v2444_v45 }
 0x288   :  { %3661 = vxpose.xlu0.b32.cont [15/16] (narrow) %v6167_v23, 40  ;;  %v5729_v11 = vpop.xlane.xlu0 %2369  ;;  %3297 = vmatprep.subr.mxu0 %v2486_v56  ;;  %v2514_v56 = vmul.f32 %v3985_v12, %v2450_v41  ;;  %v2513_v23 = vmul.f32 %v3987_v16, %v2449_v36  ;;  %v2442_v41 = vadd.f32 %v5438_v37, %v5490_v22  ;;  %v3999_v22 = vld [vmem:[%s5957_s1 + $0x128] sm:$0xff] }
 0x289   :  { %3298 = vmatpush3.msra.mxu0 %v2470_v13  ;;  %v3986_v13 = vld [vmem:[%s5957_s1 + $0x1d8] sm:$0xff]  ;;  %v2456_v36 = vadd.f32 %v5438_v37, %v5692_v38  ;;  %v4007_v16 = vld [vmem:[%s5957_s1 + $0x108] sm:$0xff] }
 0x28a   :  { %v4002_v38 = vld [vmem:[%s5957_s1 + $0x198] sm:$0xff] }
 0x28c   :  { %3663 = vxpose.xlu0.b32.end [16/16] (narrow) %v6170_v50, 40  ;;  %v2379_v10 = vpop.xlane.xlu0 %2378 }
 0x290   :  { %v5734_v54 = vpop.xlane.xlu0 %2375 }
 0x294   :  { %v2385_v52 = vpop.xlane.xlu0 %2384 }
 0x295   :  { %v3607_v29 = vpop.trf.xlu1  ;;  %v2463_v28 = vadd.f32 %v5438_v37, %v2385_v52  ;;  %v2446_v52 = vadd.f32 %v5438_v37, %v5521_v58  ;;  %v3991_v58 = vld [vmem:[%s5957_s1 + $0x148] sm:$0xff] }
 0x296   :  { %v3608_v8 = vunpack.i.l.bf16 %v3607_v29  ;;  %v3611_v48 = vunpack.i.h.bf16 %v3607_v29  ;;  %v2512_v29 = vmul.f32 %v3989_v17, %v2448_v5  ;;  %v2439_v5 = vadd.f32 %v5438_v37, %v5455_v14  ;;  %v4005_v14 = vld [vmem:[%s5957_s1 + $0x110] sm:$0xff] }
 0x298   :  { %v2382_v33 = vpop.xlane.xlu0 %2381  ;;  %2731 = vmatprep.mubr.f32.mxu0 %v3608_v8  ;;  %2821 = vmatprep.mubr.f32.mxu1 %v3611_v48  ;;  %v2461_v8 = vadd.f32 %v5438_v37, %v2379_v10  ;;  %v3992_v10 = vld [vmem:[%s5957_s1 + $0x1c0] sm:$0xff] }
 0x299   :  { %v5736_v15 = vpop.trf.xlu1  ;;  %v2462_v46 = vadd.f32 %v5438_v37, %v2382_v33  ;;  %v3990_v33 = vld [vmem:[%s5957_s1 + $0x1c8] sm:$0xff] }
 0x29a   :  { %v2527_v48 = vmul.f32 %v3990_v33, %v2463_v28  ;;  %v3616_v17 = vunpack.i.h.bf16 %v5736_v15 }
 0x29c   :  { %v2391_v60 = vpop.xlane.xlu0 %2390 }
 0x29d   :  { %v5738_v7 = vpop.trf.xlu1  ;;  %v2465_v20 = vadd.f32 %v5438_v37, %v2391_v60  ;;  %v2445_v60 = vadd.f32 %v5438_v37, %v5497_v6  ;;  %v3993_v6 = vld [vmem:[%s5957_s1 + $0x140] sm:$0xff] }
 0x29f   :  { %v2529_v55 = vmul.f32 %v3986_v13, %v2465_v20  ;;  %v2438_v13 = vadd.f32 %v5438_v37, %v5462_v49 }
 0x2a0   :  { %v2388_v47 = vpop.xlane.xlu0 %2387 }
 0x2a1   :  { %v5740_v27 = vpop.trf.xlu1  ;;  %v2464_v26 = vadd.f32 %v5438_v37, %v2388_v47  ;;  %v2511_v47 = vmul.f32 %v3991_v58, %v2447_v9  ;;  %v4006_v9 = vld [vmem:[%s5957_s1 + $0x188] sm:$0xff] }
 0x2a3   :  { %v2528_v50 = vmul.f32 %v3988_v53, %v2464_v26 }
 0x2a4   :  { %v2397_v18 = vpop.xlane.xlu0 %2396 }
 0x2a5   :  { %v5742_v2 = vpop.trf.xlu1  ;;  %v2467_v25 = vadd.f32 %v5438_v37, %v2397_v18  ;;  %v2460_v18 = vadd.f32 %v5438_v37, %v5734_v54  ;;  %v3994_v54 = vld [vmem:[%s5957_s1 + $0x1b8] sm:$0xff] }
 0x2a7   :  { %v2531_v30 = vmul.f32 %v3982_v57, %v2467_v25  ;;  %v2459_v25 = vadd.f32 %v5438_v37, %v5715_v0  ;;  %v3996_v0 = vld [vmem:[%s5957_s1 + $0x1b0] sm:$0xff]  ;;  %v2441_v57 = vadd.f32 %v5438_v37, %v5469_v1  ;;  %v4001_v1 = vld [vmem:[%s5957_s1 + $0x120] sm:$0xff] }
 0x2a8   :  { %v2394_v24 = vpop.xlane.xlu0 %2393  ;;  %v2506_v26 = vmul.f32 %v4001_v1, %v2442_v41 }
 0x2a9   :  { %v2466_v39 = vadd.f32 %v5438_v37, %v2394_v24  ;;  %v2526_v24 = vmul.f32 %v3992_v10, %v2462_v46  ;;  %v4009_v46 = vld [vmem:[%s5957_s1 + $0x100] sm:$0xff]  ;;  %v3626_v10 = vunpack.i.h.bf16 %v5740_v27 }
 0x2aa   :  { %v2502_v53 = vmul.f32 %v4009_v46, %v2438_v13 }
 0x2ab   :  { %v2530_v19 = vmul.f32 %v3984_v62, %v2466_v39  ;;  %v2509_v39 = vmul.f32 %v3995_v59, %v2445_v60  ;;  %v2455_v62 = vadd.f32 %v5438_v37, %v5617_v32  ;;  %v4004_v32 = vld [vmem:[%s5957_s1 + $0x190] sm:$0xff]  ;;  %v3621_v60 = vunpack.i.h.bf16 %v5738_v7 }
 0x2ac   :  { %v2400_v63 = vpop.xlane.xlu0 %2399  ;;  %v2520_v28 = vmul.f32 %v4004_v32, %v2456_v36  ;;  %v6171_v59 = vmov 0.0  }
 0x2ad   :  { %v2468_v61 = vadd.f32 %v5438_v37, %v2400_v63  ;;  %v2510_v63 = vmul.f32 %v3993_v6, %v2446_v52  ;;  %v3613_v52 = vunpack.i.l.bf16 %v5736_v15  ;;  %v3623_v15 = vunpack.i.l.bf16 %v5740_v27  ;;  %73 = vst.msk [vmem:[%s5960_s6] sm:$0xff] %vm72_vm0, %v6171_v59  ;;  %74 = vst.msk [vmem:[%s5960_s6 + $0x8] sm:$0xff] %vm72_vm0, %v6171_v59 }
 0x2ae   :  { %75 = vst.msk [vmem:[%s5960_s6 + $0x10] sm:$0xff] %vm72_vm0, %v6171_v59  ;;  %76 = vst.msk [vmem:[%s5960_s6 + $0x18] sm:$0xff] %vm72_vm0, %v6171_v59 }
 0x2af   :  { %v2532_v43 = vmul.f32 %v3980_v34, %v2468_v61  ;;  %v2525_v61 = vmul.f32 %v3994_v54, %v2461_v8  ;;  %v2458_v34 = vadd.f32 %v5438_v37, %v5729_v11  ;;  %v3998_v11 = vld [vmem:[%s5957_s1 + $0x1a8] sm:$0xff]  ;;  %77 = vst.msk [vmem:[%s5960_s6 + $0x20] sm:$0xff] %vm72_vm0, %v6171_v59 }
 0x2b0   :  { %v2523_v20 = vmul.f32 %v3998_v11, %v2459_v25 }
 0x2b1   :  { %3316 = vmatprep.subr.mxu1 %v2532_v43  ;;  %v2524_v43 = vmul.f32 %v3996_v0, %v2460_v18 }
 0x2b2   :  { %3317 = vmatpush3.msra.mxu1 %v2516_v3  ;;  %v2457_v3 = vadd.f32 %v5438_v37, %v5667_v40  ;;  %v4000_v40 = vld [vmem:[%s5957_s1 + $0x1a0] sm:$0xff] }
 0x2b3   :  { %3318 = vmatprep.subr.mxu1 %v2531_v30  ;;  %v2507_v30 = vmul.f32 %v3999_v22, %v2443_v4  ;;  %v2522_v44 = vmul.f32 %v4000_v40, %v2458_v34 }
 0x2b4   :  { %3319 = vmatpush3.msra.mxu1 %v2515_v42  ;;  %v2440_v42 = vadd.f32 %v5438_v37, %v5476_v31  ;;  %v4003_v31 = vld [vmem:[%s5957_s1 + $0x118] sm:$0xff]  ;;  %v2534_v21 = vld [vmem:[%s5960_s6] sm:$0xff]  ;;  %v2535_v40 = vld [vmem:[%s5960_s6 + $0x8] sm:$0xff] }
 0x2b5   :  { %3320 = vmatprep.subr.mxu1 %v2530_v19  ;;  %v2521_v19 = vmul.f32 %v4002_v38, %v2457_v3  ;;  %v2505_v12 = vmul.f32 %v4003_v31, %v2441_v57  ;;  %v2536_v31 = vld [vmem:[%s5960_s6 + $0x10] sm:$0xff] }
 0x2b6   :  { %3321 = vmatpush3.msra.mxu1 %v2514_v56  ;;  %v2454_v56 = vadd.f32 %v5438_v37, %v5642_v51  ;;  %v2519_v51 = vmul.f32 %v4006_v9, %v2455_v62  ;;  %v4008_v37 = vld [vmem:[%s5957_s1 + $0x180] sm:$0xff] }
 0x2b7   :  { %3322 = vmatprep.subr.mxu1 %v2529_v55  ;;  %v2504_v55 = vmul.f32 %v4005_v14, %v2440_v42 }
 0x2b8   :  { %3323 = vmatpush3.msra.mxu1 %v2513_v23  ;;  %v2503_v23 = vmul.f32 %v4007_v16, %v2439_v5  ;;  %v2518_v49 = vmul.f32 %v4008_v37, %v2454_v56 }
 0x2b9   :  { %3324 = vmatprep.subr.mxu1 %v2528_v50 }
 0x2ba   :  { %3325 = vmatpush3.msra.mxu1 %v2512_v29 }
 0x2bb   :  { %3326 = vmatprep.subr.mxu1 %v2527_v48  ;;  %v3618_v48 = vunpack.i.l.bf16 %v5738_v7  ;;  %v3631_v7 = vunpack.i.h.bf16 %v5742_v2 }
 0x2bc   :  { %3327 = vmatpush3.msra.mxu1 %v2511_v47 }
 0x2bd   :  { %3328 = vmatprep.subr.mxu1 %v2526_v24 }
 0x2be   :  { %3329 = vmatpush3.msra.mxu1 %v2510_v63  ;;  %v3628_v63 = vunpack.i.l.bf16 %v5742_v2 }
 0x2bf   :  { %3330 = vmatprep.subr.mxu1 %v2525_v61 }
 0x2c0   :  { %3331 = vmatpush3.msra.mxu1 %v2509_v39 }
 0x2c1   :  { %3332 = vmatprep.subr.mxu1 %v2524_v43 }
 0x2c2   :  { %3333 = vmatpush3.msra.mxu1 %v2508_v35 }
 0x2c3   :  { %3334 = vmatprep.subr.mxu1 %v2523_v20 }
 0x2c4   :  { %3335 = vmatpush3.msra.mxu1 %v2507_v30 }
 0x2c5   :  { %3336 = vmatprep.subr.mxu1 %v2522_v44 }
 0x2c6   :  { %3337 = vmatpush3.msra.mxu1 %v2506_v26 }
 0x2c7   :  { %3338 = vmatprep.subr.mxu1 %v2521_v19 }
 0x2c8   :  { %3339 = vmatpush3.msra.mxu1 %v2505_v12 }
 0x2c9   :  { %3340 = vmatprep.subr.mxu1 %v2520_v28 }
 0x2ca   :  { %3341 = vmatpush3.msra.mxu1 %v2504_v55 }
 0x2cb   :  { %3342 = vmatprep.subr.mxu1 %v2519_v51  ;;  %v2537_v51 = vld [vmem:[%s5960_s6 + $0x18] sm:$0xff] }
 0x2cc   :  { %3343 = vmatpush3.msra.mxu1 %v2503_v23  ;;  %v3664_v50 = vpop.trf.xlu0 }
 0x2cd   :  { %3344 = vmatprep.subr.mxu1 %v2518_v49  ;;  %v3668_v29 = vunpack.i.h.bf16 %v3664_v50  ;;  %v3665_v8 = vunpack.i.l.bf16 %v3664_v50 }
 0x2ce   :  { %3345 = vmatpush3.msra.mxu1 %v2502_v53 }
 0x2cf   :  { %2732 = vmatmul.mubr.f32.vlgmr.msra.gmra.mxu0 %v3665_v8  ;;  %2822 = vmatmul.mubr.f32.vlgmr.msra.gmra.mxu1 %v3668_v29 }
 0x2d0   :  { %v3669_v33 = vpop.trf.xlu0  ;;  %2736 = vmatprep.mubr.f32.mxu0 %v3613_v52  ;;  %2826 = vmatprep.mubr.f32.mxu1 %v3616_v17  ;;  %v2538_v17 = vld [vmem:[%s5960_s6 + $0x20] sm:$0xff] }
 0x2d1   :  { %v3670_v58 = vunpack.i.l.bf16 %v3669_v33  ;;  %v3673_v47 = vunpack.i.h.bf16 %v3669_v33 }
 0x2d3   :  { %2737 = vmatmul.mubr.f32.gmra.mxu0 %v3670_v58  ;;  %2827 = vmatmul.mubr.f32.gmra.mxu1 %v3673_v47 }
 0x2d4   :  { %v3674_v18 = vpop.trf.xlu0  ;;  %2741 = vmatprep.mubr.f32.mxu0 %v3618_v48  ;;  %2831 = vmatprep.mubr.f32.mxu1 %v3621_v60 }
 0x2d5   :  { %v3675_v24 = vunpack.i.l.bf16 %v3674_v18  ;;  %v3678_v45 = vunpack.i.h.bf16 %v3674_v18 }
 0x2d7   :  { %2742 = vmatmul.mubr.f32.gmra.mxu0 %v3675_v24  ;;  %2832 = vmatmul.mubr.f32.gmra.mxu1 %v3678_v45 }
 0x2d8   :  { %v3679_v6 = vpop.trf.xlu0  ;;  %2746 = vmatprep.mubr.f32.mxu0 %v3623_v15  ;;  %2836 = vmatprep.mubr.f32.mxu1 %v3626_v10 }
 0x2d9   :  { %v3680_v25 = vunpack.i.l.bf16 %v3679_v6  ;;  %v3683_v54 = vunpack.i.h.bf16 %v3679_v6 }
 0x2db   :  { %2747 = vmatmul.mubr.f32.gmra.mxu0 %v3680_v25  ;;  %2837 = vmatmul.mubr.f32.gmra.mxu1 %v3683_v54 }
 0x2dc   :  { %v3684_v61 = vpop.trf.xlu0  ;;  %2751 = vmatprep.mubr.f32.mxu0 %v3628_v63  ;;  %2841 = vmatprep.mubr.f32.mxu1 %v3631_v7 }
 0x2dd   :  { %v3688_v4 = vunpack.i.h.bf16 %v3684_v61  ;;  %v3685_v27 = vunpack.i.l.bf16 %v3684_v61 }
 0x2df   :  { %2752 = vmatmul.mubr.f32.gmra.mxu0 %v3685_v27  ;;  %2842 = vmatmul.mubr.f32.gmra.mxu1 %v3688_v4 }
 0x38f   :  { %v3299_v2 = vpop.f32.mrf.mxu0  ;;  %v3346_v39 = vpop.f32.mrf.mxu1 }
 0x391   :  { %v3300_v34 = vpop.f32.mrf.mxu0  ;;  %v3347_v0 = vpop.f32.mrf.mxu1 }
 0x392   :  { %v3301_v43 = vadd.f32 %v3300_v34, %v3299_v2  ;;  %v3348_v41 = vadd.f32 %v3347_v0, %v3346_v39 }
 0x393   :  { %v3302_v35 = vpop.f32.mrf.mxu0  ;;  %v3349_v3 = vpop.f32.mrf.mxu1 }
 0x394   :  { %v2824_v11 = vadd.f32 %v3348_v41, %v3301_v43 }
 0x395   :  { %v3303_v20 = vpop.f32.mrf.mxu0  ;;  %v3350_v57 = vpop.f32.mrf.mxu1 }
 0x396   :  { %v2847_v22 = vadd.f32 %v2824_v11, %v2534_v21  ;;  %v3304_v30 = vadd.f32 %v3303_v20, %v3302_v35  ;;  %v3351_v36 = vadd.f32 %v3350_v57, %v3349_v3 }
 0x397   :  { %v3305_v44 = vpop.f32.mrf.mxu0  ;;  %v3352_v42 = vpop.f32.mrf.mxu1 }
 0x398   :  { %2852 = vst.msk [vmem:[%s5960_s6] sm:$0xff] %vm72_vm0, %v2847_v22  ;;  %v2829_v1 = vadd.f32 %v3351_v36, %v3304_v30 }
 0x399   :  { %v3306_v26 = vpop.f32.mrf.mxu0  ;;  %v3353_v62 = vpop.f32.mrf.mxu1 }
 0x39a   :  { %v2848_v38 = vadd.f32 %v2829_v1, %v2535_v40  ;;  %v3307_v19 = vadd.f32 %v3306_v26, %v3305_v44  ;;  %v3354_v5 = vadd.f32 %v3353_v62, %v3352_v42 }
 0x39b   :  { %v3308_v12 = vpop.f32.mrf.mxu0  ;;  %v3355_v56 = vpop.f32.mrf.mxu1 }
 0x39c   :  { %2853 = vst.msk [vmem:[%s5960_s6 + $0x8] sm:$0xff] %vm72_vm0, %v2848_v38  ;;  %v2834_v32 = vadd.f32 %v3354_v5, %v3307_v19 }
 0x39d   :  { %v3309_v28 = vpop.f32.mrf.mxu0  ;;  %v3356_v13 = vpop.f32.mrf.mxu1 }
 0x39e   :  { %v2849_v14 = vadd.f32 %v2834_v32, %v2536_v31  ;;  %v3310_v55 = vadd.f32 %v3309_v28, %v3308_v12  ;;  %v3357_v9 = vadd.f32 %v3356_v13, %v3355_v56 }
 0x39f   :  { %v3311_v16 = vpop.f32.mrf.mxu0  ;;  %v3358_v23 = vpop.f32.mrf.mxu1 }
 0x3a0   :  { %2854 = vst.msk [vmem:[%s5960_s6 + $0x10] sm:$0xff] %vm72_vm0, %v2849_v14  ;;  %v2839_v37 = vadd.f32 %v3357_v9, %v3310_v55 }
 0x3a1   :  { %v3312_v49 = vpop.f32.mrf.mxu0  ;;  %v3359_v46 = vpop.f32.mrf.mxu1 }
 0x3a2   :  { %v2850_v53 = vadd.f32 %v2839_v37, %v2537_v51  ;;  %v3313_v50 = vadd.f32 %v3312_v49, %v3311_v16  ;;  %v3360_v52 = vadd.f32 %v3359_v46, %v3358_v23 }
 0x3a4   :  { %2855 = vst.msk [vmem:[%s5960_s6 + $0x18] sm:$0xff] %vm72_vm0, %v2850_v53  ;;  %v2844_v29 = vadd.f32 %v3360_v52, %v3313_v50 }
 0x3a6   :  { %v2851_v8 = vadd.f32 %v2844_v29, %v2538_v17 }
 0x3a8   :  { %2856 = vst.msk [vmem:[%s5960_s6 + $0x20] sm:$0xff] %vm72_vm0, %v2851_v8 }

</bundles_post_ra>
